<compile_context>
chip_gen: v5e
topology: v5e:2x2
jax: 0.10.0
libtpu: 0.0.40
codegen_flags: <defaults>
</compile_context>

<pallas_src>
import jax
import jax.numpy as jnp
from jax.experimental import pallas as pl
from jax.experimental.pallas import tpu as pltpu

# ----- small BertConfig-consistent dims -----
B, S = 2, 8            # batch, sequence
H = 32                 # hidden_size
NH, HD = 2, 16         # num_attention_heads, head dim
I = 64                 # intermediate_size
V = 128                # vocab_size
L = 2                  # num_hidden_layers
MAX_POS = 16           # max_position_embeddings
MASK_ID = 4            # tokenizer.mask_token_id
LN_EPS = 1e-12
NEG = -10000.0         # extended attention mask additive fill


# ---------------- shared math helpers (pure jnp; used in kernel and reference) --------
def _layernorm(x, g, b):
    mu = jnp.mean(x, axis=-1, keepdims=True)
    var = jnp.mean((x - mu) ** 2, axis=-1, keepdims=True)
    return (x - mu) * jax.lax.rsqrt(var + LN_EPS) * g + b


def _erf(x):
    # Abramowitz & Stegun 7.1.26 (max abs err ~1.5e-7) -> exact-GELU to float32 noise,
    # built only from exp / elementwise ops so it lowers cleanly in Mosaic.
    a1, a2, a3, a4, a5 = 0.254829592, -0.284496736, 1.421413741, -1.453152027, 1.061405429
    p = 0.3275911
    sgn = jnp.where(x >= 0, 1.0, -1.0)
    ax = jnp.abs(x)
    t = 1.0 / (1.0 + p * ax)
    poly = t * (a1 + t * (a2 + t * (a3 + t * (a4 + t * a5))))
    return sgn * (1.0 - poly * jnp.exp(-ax * ax))


def _gelu(x):
    # HF BERT "gelu" = exact erf-based gelu
    return 0.5 * x * (1.0 + _erf(x * 0.7071067811865476))


# ---------------- fused forward kernel (one grid step = one batch element) ------------
def _fused_forward_kernel(ids_ref, tt_ref, prob_ref, amask_ref,
                          wordemb_ref, posemb_ref, typeemb_ref, embln_ref,
                          wqkv_ref, bqkv_ref, wo_ref, bo_ref, ln1_ref,
                          wi_ref, bi_ref, wo2_ref, bo2_ref, ln2_ref,
                          wt_ref, bt_ref, clsln_ref, wd_ref, bd_ref,
                          o_ref):
    f32 = jnp.float32
    ids = ids_ref[0]                            # (S, 1) int32
    tt = tt_ref[0].astype(f32)                  # (S, 1)
    prob = prob_ref[0]                          # (S, 1)
    amask = (1.0 - amask_ref[0]) * NEG          # (1, S) additive key mask

    word_tab = wordemb_ref[...]                 # (V, H)
    pos_slab = posemb_ref[0:S, :]               # (S, H)
    type_tab = typeemb_ref[...]                 # (2, H)
    embln = embln_ref[...]                      # (2, H): row0=gamma, row1=beta
    emb_g, emb_b = embln[0:1, :], embln[1:2, :]

    # --- BertEmbeddings: word gather via one-hot matmul (exact), pos slice, type interp
    vocab_iota = jax.lax.broadcasted_iota(jnp.int32, (S, V), 1)
    onehot = (ids == vocab_iota).astype(f32)                              # (S, V)
    word = jnp.dot(onehot, word_tab, preferred_element_type=f32)          # (S, H)
    typ = type_tab[0:1, :] + tt * (type_tab[1:2, :] - type_tab[0:1, :])   # token_type in {0,1}
    embed = _layernorm(word + pos_slab + typ, emb_g, emb_b)

    # --- mask embedding (all-[MASK] input, token_type=0); detached -> forward-only here
    mask_word = word_tab[MASK_ID:MASK_ID + 1, :]                          # (1, H)
    mask_embed = _layernorm(mask_word + pos_slab + type_tab[0:1, :], emb_g, emb_b)

    # --- cor_embed = prob * mask_embed + (1 - prob) * embed
    x = prob * mask_embed + (1.0 - prob) * embed                          # (S, H)

    # --- BertEncoder: L fused layers, fused QKV, single output projection per layer
    scale = 1.0 / (HD ** 0.5)
    for l in range(L):
        qkv = jnp.dot(x, wqkv_ref[l], preferred_element_type=f32) + bqkv_ref[l]  # (S, 3H)
        q, k, v = qkv[:, 0:H], qkv[:, H:2 * H], qkv[:, 2 * H:3 * H]

        ctx_heads = []
        for h in range(NH):                      # NH tiny -> static loop
            cs = slice(h * HD, (h + 1) * HD)
            qh, kh, vh = q[:, cs], k[:, cs], v[:, cs]                     # (S, HD)
            s = jax.lax.dot_general(qh, kh, (((1,), (1,)), ((), ())),
                                    preferred_element_type=f32) * scale + amask
            s = s - jnp.max(s, axis=-1, keepdims=True)
            e = jnp.exp(s)
            inv = pl.reciprocal(jnp.sum(e, axis=-1, keepdims=True), approx=True)
            pr = e * inv
            ctx_heads.append(jnp.dot(pr, vh, preferred_element_type=f32))  # (S, HD)
        ctx = jnp.concatenate(ctx_heads, axis=-1)                          # (S, H)

        attn_dense = jnp.dot(ctx, wo_ref[l], preferred_element_type=f32) + bo_ref[l]
        ln1 = ln1_ref[l]
        attn_out = _layernorm(attn_dense + x, ln1[0:1, :], ln1[1:2, :])

        inter = _gelu(jnp.dot(attn_out, wi_ref[l], preferred_element_type=f32) + bi_ref[l])
        ffn = jnp.dot(inter, wo2_ref[l], preferred_element_type=f32) + bo2_ref[l]
        ln2 = ln2_ref[l]
        x = _layernorm(ffn + attn_out, ln2[0:1, :], ln2[1:2, :])

    # --- BertOnlyMLMHead (residual_connection=False, dropout identity in eval)
    hh = _gelu(jnp.dot(x, wt_ref[...], preferred_element_type=f32) + bt_ref[...])
    clsln = clsln_ref[...]
    hh = _layernorm(hh, clsln[0:1, :], clsln[1:2, :])
    scores = jnp.dot(hh, wd_ref[...], preferred_element_type=f32) + bd_ref[...]   # (S, V)
    o_ref[...] = scores[None, :, :]


# ---------------- BlockSpec helpers ----------------
def _full_spec(shape):
    nd = len(shape)
    return pl.BlockSpec(tuple(shape), lambda b, _nd=nd: (0,) * _nd)


def _batch_spec(shape):
    nd = len(shape)
    return pl.BlockSpec((1,) + tuple(shape[1:]),
                        lambda b, _nd=nd: (b,) + (0,) * (_nd - 1))


# ---------------- parameters (deterministic synthetic init; layers stacked) -----------
def init_params(key):
    def nrm(k, shape, scale=0.02):
        return scale * jax.random.normal(k, shape, jnp.float32)

    ks = iter(jax.random.split(key, 24))
    base_ln = jnp.stack([jnp.ones((H,), jnp.float32), jnp.zeros((H,), jnp.float32)])  # (2,H)
    p = {
        "word_emb": nrm(next(ks), (V, H)),
        "pos_emb": nrm(next(ks), (MAX_POS, H)),
        "type_emb": nrm(next(ks), (2, H)),
        "emb_ln": base_ln,
        "wqkv": nrm(next(ks), (L, H, 3 * H)),       # [wq | wk | wv] per layer
        "bqkv": nrm(next(ks), (L, 1, 3 * H)),
        "wo": nrm(next(ks), (L, H, H)),
        "bo": nrm(next(ks), (L, 1, H)),
        "ln1": jnp.tile(base_ln[None], (L, 1, 1)),
        "wi": nrm(next(ks), (L, H, I)),
        "bi": nrm(next(ks), (L, 1, I)),
        "wo2": nrm(next(ks), (L, I, H)),
        "bo2": nrm(next(ks), (L, 1, H)),
        "ln2": jnp.tile(base_ln[None], (L, 1, 1)),
        "cls_wt": nrm(next(ks), (H, H)),
        "cls_bt": nrm(next(ks), (1, H)),
        "cls_ln": base_ln,
        "cls_wd": nrm(next(ks), (H, V)),
        "cls_bd": nrm(next(ks), (1, V)),
    }
    return p


# ---------------- TeacherModel.forward (single fused Pallas call) ----------------
@jax.jit
def teacher_forward(params, input_ids, token_type_ids, attention_mask, prob):
    f32 = jnp.float32
    ids3 = input_ids.astype(jnp.int32).reshape(B, S, 1)
    tt3 = token_type_ids.astype(jnp.int32).reshape(B, S, 1)
    prob3 = prob.astype(f32).reshape(B, S, 1)
    am3 = attention_mask.astype(f32).reshape(B, 1, S)

    inputs = [
        ids3, tt3, prob3, am3,
        params["word_emb"], params["pos_emb"], params["type_emb"], params["emb_ln"],
        params["wqkv"], params["bqkv"], params["wo"], params["bo"], params["ln1"],
        params["wi"], params["bi"], params["wo2"], params["bo2"], params["ln2"],
        params["cls_wt"], params["cls_bt"], params["cls_ln"],
        params["cls_wd"], params["cls_bd"],
    ]
    in_specs = ([_batch_spec(a.shape) for a in inputs[:4]]
                + [_full_spec(w.shape) for w in inputs[4:]])

    out = pl.pallas_call(
        _fused_forward_kernel,
        grid=(B,),
        in_specs=in_specs,
        out_specs=pl.BlockSpec((1, S, V), lambda b: (b, 0, 0)),
        out_shape=jax.ShapeDtypeStruct((B, S, V), f32),
        compiler_params=pltpu.CompilerParams(dimension_semantics=("parallel",)),
    )(*inputs)
    return out


# ---------------- pure-JAX reference (same math, no Pallas) ----------------
def ref_forward(params, input_ids, token_type_ids, attention_mask, prob):
    pos_ids = jnp.arange(S, dtype=jnp.int32)
    eg, eb = params["emb_ln"][0:1], params["emb_ln"][1:2]
    word = params["word_emb"][input_ids]
    pos = params["pos_emb"][pos_ids][None]
    typ = params["type_emb"][token_type_ids]
    embed = _layernorm(word + pos + typ, eg, eb)
    mask_word = jnp.broadcast_to(params["word_emb"][MASK_ID][None, None, :], (B, S, H))
    mask_embed = _layernorm(mask_word + pos + params["type_emb"][0][None, None, :], eg, eb)
    hidden = prob * mask_embed + (1.0 - prob) * embed
    ext = (1.0 - attention_mask.astype(jnp.float32))[:, None, None, :] * NEG  # (B,1,1,S)

    def split(t):
        return t.reshape(B, S, NH, HD).transpose(0, 2, 1, 3)

    for l in range(L):
        wqkv, bqkv = params["wqkv"][l], params["bqkv"][l]
        q = split(hidden @ wqkv[:, 0:H] + bqkv[:, 0:H])
        k = split(hidden @ wqkv[:, H:2 * H] + bqkv[:, H:2 * H])
        v = split(hidden @ wqkv[:, 2 * H:3 * H] + bqkv[:, 2 * H:3 * H])
        s = jnp.einsum("bnqd,bnkd->bnqk", q, k) / (HD ** 0.5) + ext
        p = jax.nn.softmax(s, axis=-1)
        ctx = jnp.einsum("bnqk,bnkd->bnqd", p, v).transpose(0, 2, 1, 3).reshape(B, S, H)
        attn = _layernorm(ctx @ params["wo"][l] + params["bo"][l] + hidden,
                          params["ln1"][l, 0:1], params["ln1"][l, 1:2])
        inter = _gelu(attn @ params["wi"][l] + params["bi"][l])
        hidden = _layernorm(inter @ params["wo2"][l] + params["bo2"][l] + attn,
                            params["ln2"][l, 0:1], params["ln2"][l, 1:2])
    h = _gelu(hidden @ params["cls_wt"] + params["cls_bt"])
    h = _layernorm(h, params["cls_ln"][0:1], params["cls_ln"][1:2])
    return h @ params["cls_wd"] + params["cls_bd"]


if __name__ == "__main__":
    key = jax.random.PRNGKey(0)
    kp, kid, kprob = jax.random.split(key, 3)
    params = init_params(kp)

    # deterministic synthetic "tokenized" inputs (tokenizer itself is untranslatable)
    input_ids = jax.random.randint(kid, (B, S), 0, V, dtype=jnp.int32)
    token_type_ids = jnp.zeros((B, S), jnp.int32)
    attention_mask = jnp.ones((B, S), jnp.float32).at[1, S - 2:].set(0.0)  # pad last 2 of batch 1
    prob = jax.random.uniform(kprob, (B, S, 1), jnp.float32)

    out = teacher_forward(params, input_ids, token_type_ids, attention_mask, prob)
    out = jax.block_until_ready(out)

    ref = ref_forward(params, input_ids, token_type_ids, attention_mask, prob)
    assert out.shape == (B, S, V), out.shape
    assert bool(jnp.all(jnp.isfinite(out)))
    assert bool(jnp.allclose(out, ref, atol=2e-3, rtol=2e-3)), \
        float(jnp.max(jnp.abs(out - ref)))
    print("KERNEL_OK")
</pallas_src>

<mosaic_0001>
module attributes {stable_mosaic.version = 11 : i64} {
  func.func @_fused_forward_kernel(%arg0: i32, %arg1: memref<1x8x1xi32, #tpu.memory_space<vmem>>, %arg2: memref<1x8x1xi32, #tpu.memory_space<vmem>>, %arg3: memref<1x8x1xf32, #tpu.memory_space<vmem>>, %arg4: memref<1x1x8xf32, #tpu.memory_space<vmem>>, %arg5: memref<128x32xf32, #tpu.memory_space<vmem>>, %arg6: memref<16x32xf32, #tpu.memory_space<vmem>>, %arg7: memref<2x32xf32, #tpu.memory_space<vmem>>, %arg8: memref<2x32xf32, #tpu.memory_space<vmem>>, %arg9: memref<2x32x96xf32, #tpu.memory_space<vmem>>, %arg10: memref<2x1x96xf32, #tpu.memory_space<vmem>>, %arg11: memref<2x32x32xf32, #tpu.memory_space<vmem>>, %arg12: memref<2x1x32xf32, #tpu.memory_space<vmem>>, %arg13: memref<2x2x32xf32, #tpu.memory_space<vmem>>, %arg14: memref<2x32x64xf32, #tpu.memory_space<vmem>>, %arg15: memref<2x1x64xf32, #tpu.memory_space<vmem>>, %arg16: memref<2x64x32xf32, #tpu.memory_space<vmem>>, %arg17: memref<2x1x32xf32, #tpu.memory_space<vmem>>, %arg18: memref<2x2x32xf32, #tpu.memory_space<vmem>>, %arg19: memref<32x32xf32, #tpu.memory_space<vmem>>, %arg20: memref<1x32xf32, #tpu.memory_space<vmem>>, %arg21: memref<2x32xf32, #tpu.memory_space<vmem>>, %arg22: memref<32x128xf32, #tpu.memory_space<vmem>>, %arg23: memref<1x128xf32, #tpu.memory_space<vmem>>, %arg24: memref<1x8x128xf32, #tpu.memory_space<vmem>>) attributes {dimension_semantics = [#tpu.dimension_semantics<parallel>], iteration_bounds = array<i64: 2>, scalar_prefetch = 0 : i64, scratch_operands = 0 : i64, tpu.core_type = #tpu.core_type<tc>, window_params = [{transform_indices = @transform_0, window_bounds = array<i64: 1, 8, 1>}, {transform_indices = @transform_1, window_bounds = array<i64: 1, 8, 1>}, {transform_indices = @transform_2, window_bounds = array<i64: 1, 8, 1>}, {transform_indices = @transform_3, window_bounds = array<i64: 1, 1, 8>}, {pipeline_mode = #tpu.pipeline_mode<synchronous>, transform_indices = @transform_4, window_bounds = array<i64: 128, 32>}, {pipeline_mode = #tpu.pipeline_mode<synchronous>, transform_indices = @transform_5, window_bounds = array<i64: 16, 32>}, {pipeline_mode = #tpu.pipeline_mode<synchronous>, transform_indices = @transform_6, window_bounds = array<i64: 2, 32>}, {pipeline_mode = #tpu.pipeline_mode<synchronous>, transform_indices = @transform_7, window_bounds = array<i64: 2, 32>}, {pipeline_mode = #tpu.pipeline_mode<synchronous>, transform_indices = @transform_8, window_bounds = array<i64: 2, 32, 96>}, {pipeline_mode = #tpu.pipeline_mode<synchronous>, transform_indices = @transform_9, window_bounds = array<i64: 2, 1, 96>}, {pipeline_mode = #tpu.pipeline_mode<synchronous>, transform_indices = @transform_10, window_bounds = array<i64: 2, 32, 32>}, {pipeline_mode = #tpu.pipeline_mode<synchronous>, transform_indices = @transform_11, window_bounds = array<i64: 2, 1, 32>}, {pipeline_mode = #tpu.pipeline_mode<synchronous>, transform_indices = @transform_12, window_bounds = array<i64: 2, 2, 32>}, {pipeline_mode = #tpu.pipeline_mode<synchronous>, transform_indices = @transform_13, window_bounds = array<i64: 2, 32, 64>}, {pipeline_mode = #tpu.pipeline_mode<synchronous>, transform_indices = @transform_14, window_bounds = array<i64: 2, 1, 64>}, {pipeline_mode = #tpu.pipeline_mode<synchronous>, transform_indices = @transform_15, window_bounds = array<i64: 2, 64, 32>}, {pipeline_mode = #tpu.pipeline_mode<synchronous>, transform_indices = @transform_16, window_bounds = array<i64: 2, 1, 32>}, {pipeline_mode = #tpu.pipeline_mode<synchronous>, transform_indices = @transform_17, window_bounds = array<i64: 2, 2, 32>}, {pipeline_mode = #tpu.pipeline_mode<synchronous>, transform_indices = @transform_18, window_bounds = array<i64: 32, 32>}, {pipeline_mode = #tpu.pipeline_mode<synchronous>, transform_indices = @transform_19, window_bounds = array<i64: 1, 32>}, {pipeline_mode = #tpu.pipeline_mode<synchronous>, transform_indices = @transform_20, window_bounds = array<i64: 2, 32>}, {pipeline_mode = #tpu.pipeline_mode<synchronous>, transform_indices = @transform_21, window_bounds = array<i64: 32, 128>}, {pipeline_mode = #tpu.pipeline_mode<synchronous>, transform_indices = @transform_22, window_bounds = array<i64: 1, 128>}, {transform_indices = @transform_23, window_bounds = array<i64: 1, 8, 128>}]} {
    %c0 = arith.constant 0 : index
    %c0_0 = arith.constant 0 : index
    %c0_1 = arith.constant 0 : index
    %0 = vector.load %arg1[%c0, %c0_0, %c0_1] : memref<1x8x1xi32, #tpu.memory_space<vmem>>, vector<1x8x1xi32>
    %1 = vector.shape_cast %0 : vector<1x8x1xi32> to vector<8x1xi32>
    %c0_2 = arith.constant 0 : index
    %c0_3 = arith.constant 0 : index
    %c0_4 = arith.constant 0 : index
    %2 = vector.load %arg2[%c0_2, %c0_3, %c0_4] : memref<1x8x1xi32, #tpu.memory_space<vmem>>, vector<1x8x1xi32>
    %3 = vector.shape_cast %2 : vector<1x8x1xi32> to vector<8x1xi32>
    %4 = arith.sitofp %3 : vector<8x1xi32> to vector<8x1xf32>
    %c0_5 = arith.constant 0 : index
    %c0_6 = arith.constant 0 : index
    %c0_7 = arith.constant 0 : index
    %5 = vector.load %arg3[%c0_5, %c0_6, %c0_7] : memref<1x8x1xf32, #tpu.memory_space<vmem>>, vector<1x8x1xf32>
    %6 = vector.shape_cast %5 : vector<1x8x1xf32> to vector<8x1xf32>
    %c0_8 = arith.constant 0 : index
    %c0_9 = arith.constant 0 : index
    %c0_10 = arith.constant 0 : index
    %7 = vector.load %arg4[%c0_8, %c0_9, %c0_10] : memref<1x1x8xf32, #tpu.memory_space<vmem>>, vector<1x1x8xf32>
    %8 = vector.shape_cast %7 : vector<1x1x8xf32> to vector<1x8xf32>
    %cst = arith.constant 1.000000e+00 : f32
    %9 = vector.broadcast %cst : f32 to vector<1x8xf32>
    %10 = arith.subf %9, %8 : vector<1x8xf32>
    %cst_11 = arith.constant -1.000000e+04 : f32
    %11 = vector.broadcast %cst_11 : f32 to vector<1x8xf32>
    %12 = arith.mulf %10, %11 : vector<1x8xf32>
    %c0_12 = arith.constant 0 : index
    %c0_13 = arith.constant 0 : index
    %13 = vector.load %arg5[%c0_12, %c0_13] : memref<128x32xf32, #tpu.memory_space<vmem>>, vector<128x32xf32>
    %c0_14 = arith.constant 0 : index
    %c0_15 = arith.constant 0 : index
    %14 = vector.load %arg6[%c0_14, %c0_15] : memref<16x32xf32, #tpu.memory_space<vmem>>, vector<8x32xf32>
    %c0_16 = arith.constant 0 : index
    %c0_17 = arith.constant 0 : index
    %15 = vector.load %arg7[%c0_16, %c0_17] : memref<2x32xf32, #tpu.memory_space<vmem>>, vector<2x32xf32>
    %c0_18 = arith.constant 0 : index
    %c0_19 = arith.constant 0 : index
    %16 = vector.load %arg8[%c0_18, %c0_19] : memref<2x32xf32, #tpu.memory_space<vmem>>, vector<2x32xf32>
    %17 = vector.extract_strided_slice %16 {offsets = [0, 0], sizes = [1, 32], strides = [1, 1]} : vector<2x32xf32> to vector<1x32xf32>
    %18 = vector.extract_strided_slice %16 {offsets = [1, 0], sizes = [1, 32], strides = [1, 1]} : vector<2x32xf32> to vector<1x32xf32>
    %19 = tpu.iota {dimensions = array<i32: 1>} : vector<8x128xi32>
    %20 = vector.broadcast %1 : vector<8x1xi32> to vector<8x128xi32>
    %21 = arith.cmpi eq, %20, %19 : vector<8x128xi32>
    %22 = arith.extui %21 : vector<8x128xi1> to vector<8x128xi32>
    %23 = arith.sitofp %22 : vector<8x128xi32> to vector<8x128xf32>
    %cst_20 = arith.constant dense<0.000000e+00> : vector<8x32xf32>
    %24 = tpu.matmul %23, %13, %cst_20 {dimension_numbers = #tpu.dot_dimension_numbers<[1], [0], [0], [1], [0, 0, 1, 1], [], []>} : vector<8x128xf32>, vector<128x32xf32>, vector<8x32xf32> -> vector<8x32xf32>
    %25 = vector.extract_strided_slice %15 {offsets = [0, 0], sizes = [1, 32], strides = [1, 1]} : vector<2x32xf32> to vector<1x32xf32>
    %26 = vector.extract_strided_slice %15 {offsets = [1, 0], sizes = [1, 32], strides = [1, 1]} : vector<2x32xf32> to vector<1x32xf32>
    %27 = vector.extract_strided_slice %15 {offsets = [0, 0], sizes = [1, 32], strides = [1, 1]} : vector<2x32xf32> to vector<1x32xf32>
    %28 = arith.subf %26, %27 : vector<1x32xf32>
    %29 = vector.broadcast %4 : vector<8x1xf32> to vector<8x32xf32>
    %30 = vector.broadcast %28 : vector<1x32xf32> to vector<8x32xf32>
    %31 = arith.mulf %29, %30 : vector<8x32xf32>
    %32 = vector.broadcast %25 : vector<1x32xf32> to vector<8x32xf32>
    %33 = arith.addf %32, %31 : vector<8x32xf32>
    %34 = arith.addf %24, %14 : vector<8x32xf32>
    %35 = arith.addf %34, %33 : vector<8x32xf32>
    %cst_21 = arith.constant dense<0.000000e+00> : vector<8xf32>
    %36 = vector.multi_reduction <add>, %35, %cst_21 [1] : vector<8x32xf32> to vector<8xf32>
    %37 = vector.shape_cast %36 : vector<8xf32> to vector<8x1xf32>
    %cst_22 = arith.constant 3.200000e+01 : f32
    %38 = vector.broadcast %cst_22 : f32 to vector<8x1xf32>
    %39 = arith.divf %37, %38 : vector<8x1xf32>
    %40 = vector.broadcast %39 : vector<8x1xf32> to vector<8x32xf32>
    %41 = arith.subf %35, %40 : vector<8x32xf32>
    %42 = arith.mulf %41, %41 : vector<8x32xf32>
    %cst_23 = arith.constant dense<0.000000e+00> : vector<8xf32>
    %43 = vector.multi_reduction <add>, %42, %cst_23 [1] : vector<8x32xf32> to vector<8xf32>
    %44 = vector.shape_cast %43 : vector<8xf32> to vector<8x1xf32>
    %cst_24 = arith.constant 3.200000e+01 : f32
    %45 = vector.broadcast %cst_24 : f32 to vector<8x1xf32>
    %46 = arith.divf %44, %45 : vector<8x1xf32>
    %47 = vector.broadcast %39 : vector<8x1xf32> to vector<8x32xf32>
    %48 = arith.subf %35, %47 : vector<8x32xf32>
    %cst_25 = arith.constant 9.99999996E-13 : f32
    %49 = vector.broadcast %cst_25 : f32 to vector<8x1xf32>
    %50 = arith.addf %46, %49 : vector<8x1xf32>
    %51 = math.rsqrt %50 : vector<8x1xf32>
    %52 = vector.broadcast %51 : vector<8x1xf32> to vector<8x32xf32>
    %53 = arith.mulf %48, %52 : vector<8x32xf32>
    %54 = vector.broadcast %17 : vector<1x32xf32> to vector<8x32xf32>
    %55 = arith.mulf %53, %54 : vector<8x32xf32>
    %56 = vector.broadcast %18 : vector<1x32xf32> to vector<8x32xf32>
    %57 = arith.addf %55, %56 : vector<8x32xf32>
    %58 = vector.extract_strided_slice %13 {offsets = [4, 0], sizes = [1, 32], strides = [1, 1]} : vector<128x32xf32> to vector<1x32xf32>
    %59 = vector.broadcast %58 : vector<1x32xf32> to vector<8x32xf32>
    %60 = arith.addf %59, %14 : vector<8x32xf32>
    %61 = vector.extract_strided_slice %15 {offsets = [0, 0], sizes = [1, 32], strides = [1, 1]} : vector<2x32xf32> to vector<1x32xf32>
    %62 = vector.broadcast %61 : vector<1x32xf32> to vector<8x32xf32>
    %63 = arith.addf %60, %62 : vector<8x32xf32>
    %cst_26 = arith.constant dense<0.000000e+00> : vector<8xf32>
    %64 = vector.multi_reduction <add>, %63, %cst_26 [1] : vector<8x32xf32> to vector<8xf32>
    %65 = vector.shape_cast %64 : vector<8xf32> to vector<8x1xf32>
    %cst_27 = arith.constant 3.200000e+01 : f32
    %66 = vector.broadcast %cst_27 : f32 to vector<8x1xf32>
    %67 = arith.divf %65, %66 : vector<8x1xf32>
    %68 = vector.broadcast %67 : vector<8x1xf32> to vector<8x32xf32>
    %69 = arith.subf %63, %68 : vector<8x32xf32>
    %70 = arith.mulf %69, %69 : vector<8x32xf32>
    %cst_28 = arith.constant dense<0.000000e+00> : vector<8xf32>
    %71 = vector.multi_reduction <add>, %70, %cst_28 [1] : vector<8x32xf32> to vector<8xf32>
    %72 = vector.shape_cast %71 : vector<8xf32> to vector<8x1xf32>
    %cst_29 = arith.constant 3.200000e+01 : f32
    %73 = vector.broadcast %cst_29 : f32 to vector<8x1xf32>
    %74 = arith.divf %72, %73 : vector<8x1xf32>
    %75 = vector.broadcast %67 : vector<8x1xf32> to vector<8x32xf32>
    %76 = arith.subf %63, %75 : vector<8x32xf32>
    %cst_30 = arith.constant 9.99999996E-13 : f32
    %77 = vector.broadcast %cst_30 : f32 to vector<8x1xf32>
    %78 = arith.addf %74, %77 : vector<8x1xf32>
    %79 = math.rsqrt %78 : vector<8x1xf32>
    %80 = vector.broadcast %79 : vector<8x1xf32> to vector<8x32xf32>
    %81 = arith.mulf %76, %80 : vector<8x32xf32>
    %82 = vector.broadcast %17 : vector<1x32xf32> to vector<8x32xf32>
    %83 = arith.mulf %81, %82 : vector<8x32xf32>
    %84 = vector.broadcast %18 : vector<1x32xf32> to vector<8x32xf32>
    %85 = arith.addf %83, %84 : vector<8x32xf32>
    %86 = vector.broadcast %6 : vector<8x1xf32> to vector<8x32xf32>
    %87 = arith.mulf %86, %85 : vector<8x32xf32>
    %cst_31 = arith.constant 1.000000e+00 : f32
    %88 = vector.broadcast %cst_31 : f32 to vector<8x1xf32>
    %89 = arith.subf %88, %6 : vector<8x1xf32>
    %90 = vector.broadcast %89 : vector<8x1xf32> to vector<8x32xf32>
    %91 = arith.mulf %90, %57 : vector<8x32xf32>
    %92 = arith.addf %87, %91 : vector<8x32xf32>
    %c0_32 = arith.constant 0 : index
    %c0_33 = arith.constant 0 : index
    %c0_34 = arith.constant 0 : index
    %93 = vector.load %arg9[%c0_32, %c0_33, %c0_34] : memref<2x32x96xf32, #tpu.memory_space<vmem>>, vector<1x32x96xf32>
    %94 = vector.shape_cast %93 : vector<1x32x96xf32> to vector<32x96xf32>
    %cst_35 = arith.constant dense<0.000000e+00> : vector<8x96xf32>
    %95 = tpu.matmul %92, %94, %cst_35 {dimension_numbers = #tpu.dot_dimension_numbers<[1], [0], [0], [1], [0, 0, 1, 1], [], []>} : vector<8x32xf32>, vector<32x96xf32>, vector<8x96xf32> -> vector<8x96xf32>
    %c0_36 = arith.constant 0 : index
    %c0_37 = arith.constant 0 : index
    %c0_38 = arith.constant 0 : index
    %96 = vector.load %arg10[%c0_36, %c0_37, %c0_38] : memref<2x1x96xf32, #tpu.memory_space<vmem>>, vector<1x1x96xf32>
    %97 = vector.shape_cast %96 : vector<1x1x96xf32> to vector<1x96xf32>
    %98 = vector.broadcast %97 : vector<1x96xf32> to vector<8x96xf32>
    %99 = arith.addf %95, %98 : vector<8x96xf32>
    %100 = vector.extract_strided_slice %99 {offsets = [0, 0], sizes = [8, 32], strides = [1, 1]} : vector<8x96xf32> to vector<8x32xf32>
    %101 = vector.extract_strided_slice %99 {offsets = [0, 32], sizes = [8, 32], strides = [1, 1]} : vector<8x96xf32> to vector<8x32xf32>
    %102 = vector.extract_strided_slice %99 {offsets = [0, 64], sizes = [8, 32], strides = [1, 1]} : vector<8x96xf32> to vector<8x32xf32>
    %103 = vector.extract_strided_slice %100 {offsets = [0, 0], sizes = [8, 16], strides = [1, 1]} : vector<8x32xf32> to vector<8x16xf32>
    %104 = vector.extract_strided_slice %101 {offsets = [0, 0], sizes = [8, 16], strides = [1, 1]} : vector<8x32xf32> to vector<8x16xf32>
    %105 = vector.extract_strided_slice %102 {offsets = [0, 0], sizes = [8, 16], strides = [1, 1]} : vector<8x32xf32> to vector<8x16xf32>
    %cst_39 = arith.constant dense<0.000000e+00> : vector<8x8xf32>
    %106 = tpu.matmul %103, %104, %cst_39 {dimension_numbers = #tpu.dot_dimension_numbers<[1], [1], [0], [0], [0, 0, 1, 0], [], []>} : vector<8x16xf32>, vector<8x16xf32>, vector<8x8xf32> -> vector<8x8xf32>
    %cst_40 = arith.constant 2.500000e-01 : f32
    %107 = vector.broadcast %cst_40 : f32 to vector<8x8xf32>
    %108 = arith.mulf %106, %107 : vector<8x8xf32>
    %109 = vector.broadcast %12 : vector<1x8xf32> to vector<8x8xf32>
    %110 = arith.addf %108, %109 : vector<8x8xf32>
    %cst_41 = arith.constant dense<0xFF800000> : vector<8xf32>
    %111 = vector.multi_reduction <maximumf>, %110, %cst_41 [1] : vector<8x8xf32> to vector<8xf32>
    %112 = vector.shape_cast %111 : vector<8xf32> to vector<8x1xf32>
    %113 = vector.broadcast %112 : vector<8x1xf32> to vector<8x8xf32>
    %114 = arith.subf %110, %113 : vector<8x8xf32>
    %115 = math.exp %114 : vector<8x8xf32>
    %cst_42 = arith.constant dense<0.000000e+00> : vector<8xf32>
    %116 = vector.multi_reduction <add>, %115, %cst_42 [1] : vector<8x8xf32> to vector<8xf32>
    %117 = vector.shape_cast %116 : vector<8xf32> to vector<8x1xf32>
    %118 = tpu.reciprocal %117 {approx = true} : vector<8x1xf32> -> vector<8x1xf32>
    %119 = vector.broadcast %118 : vector<8x1xf32> to vector<8x8xf32>
    %120 = arith.mulf %115, %119 : vector<8x8xf32>
    %cst_43 = arith.constant dense<0.000000e+00> : vector<8x16xf32>
    %121 = tpu.matmul %120, %105, %cst_43 {dimension_numbers = #tpu.dot_dimension_numbers<[1], [0], [0], [1], [0, 0, 1, 1], [], []>} : vector<8x8xf32>, vector<8x16xf32>, vector<8x16xf32> -> vector<8x16xf32>
    %122 = vector.extract_strided_slice %100 {offsets = [0, 16], sizes = [8, 16], strides = [1, 1]} : vector<8x32xf32> to vector<8x16xf32>
    %123 = vector.extract_strided_slice %101 {offsets = [0, 16], sizes = [8, 16], strides = [1, 1]} : vector<8x32xf32> to vector<8x16xf32>
    %124 = vector.extract_strided_slice %102 {offsets = [0, 16], sizes = [8, 16], strides = [1, 1]} : vector<8x32xf32> to vector<8x16xf32>
    %cst_44 = arith.constant dense<0.000000e+00> : vector<8x8xf32>
    %125 = tpu.matmul %122, %123, %cst_44 {dimension_numbers = #tpu.dot_dimension_numbers<[1], [1], [0], [0], [0, 0, 1, 0], [], []>} : vector<8x16xf32>, vector<8x16xf32>, vector<8x8xf32> -> vector<8x8xf32>
    %cst_45 = arith.constant 2.500000e-01 : f32
    %126 = vector.broadcast %cst_45 : f32 to vector<8x8xf32>
    %127 = arith.mulf %125, %126 : vector<8x8xf32>
    %128 = vector.broadcast %12 : vector<1x8xf32> to vector<8x8xf32>
    %129 = arith.addf %127, %128 : vector<8x8xf32>
    %cst_46 = arith.constant dense<0xFF800000> : vector<8xf32>
    %130 = vector.multi_reduction <maximumf>, %129, %cst_46 [1] : vector<8x8xf32> to vector<8xf32>
    %131 = vector.shape_cast %130 : vector<8xf32> to vector<8x1xf32>
    %132 = vector.broadcast %131 : vector<8x1xf32> to vector<8x8xf32>
    %133 = arith.subf %129, %132 : vector<8x8xf32>
    %134 = math.exp %133 : vector<8x8xf32>
    %cst_47 = arith.constant dense<0.000000e+00> : vector<8xf32>
    %135 = vector.multi_reduction <add>, %134, %cst_47 [1] : vector<8x8xf32> to vector<8xf32>
    %136 = vector.shape_cast %135 : vector<8xf32> to vector<8x1xf32>
    %137 = tpu.reciprocal %136 {approx = true} : vector<8x1xf32> -> vector<8x1xf32>
    %138 = vector.broadcast %137 : vector<8x1xf32> to vector<8x8xf32>
    %139 = arith.mulf %134, %138 : vector<8x8xf32>
    %cst_48 = arith.constant dense<0.000000e+00> : vector<8x16xf32>
    %140 = tpu.matmul %139, %124, %cst_48 {dimension_numbers = #tpu.dot_dimension_numbers<[1], [0], [0], [1], [0, 0, 1, 1], [], []>} : vector<8x8xf32>, vector<8x16xf32>, vector<8x16xf32> -> vector<8x16xf32>
    %141 = tpu.concatenate %121, %140 in 1 : vector<8x16xf32>, vector<8x16xf32> -> vector<8x32xf32>
    %c0_49 = arith.constant 0 : index
    %c0_50 = arith.constant 0 : index
    %c0_51 = arith.constant 0 : index
    %142 = vector.load %arg11[%c0_49, %c0_50, %c0_51] : memref<2x32x32xf32, #tpu.memory_space<vmem>>, vector<1x32x32xf32>
    %143 = vector.shape_cast %142 : vector<1x32x32xf32> to vector<32x32xf32>
    %cst_52 = arith.constant dense<0.000000e+00> : vector<8x32xf32>
    %144 = tpu.matmul %141, %143, %cst_52 {dimension_numbers = #tpu.dot_dimension_numbers<[1], [0], [0], [1], [0, 0, 1, 1], [], []>} : vector<8x32xf32>, vector<32x32xf32>, vector<8x32xf32> -> vector<8x32xf32>
    %c0_53 = arith.constant 0 : index
    %c0_54 = arith.constant 0 : index
    %c0_55 = arith.constant 0 : index
    %145 = vector.load %arg12[%c0_53, %c0_54, %c0_55] : memref<2x1x32xf32, #tpu.memory_space<vmem>>, vector<1x1x32xf32>
    %146 = vector.shape_cast %145 : vector<1x1x32xf32> to vector<1x32xf32>
    %147 = vector.broadcast %146 : vector<1x32xf32> to vector<8x32xf32>
    %148 = arith.addf %144, %147 : vector<8x32xf32>
    %c0_56 = arith.constant 0 : index
    %c0_57 = arith.constant 0 : index
    %c0_58 = arith.constant 0 : index
    %149 = vector.load %arg13[%c0_56, %c0_57, %c0_58] : memref<2x2x32xf32, #tpu.memory_space<vmem>>, vector<1x2x32xf32>
    %150 = vector.shape_cast %149 : vector<1x2x32xf32> to vector<2x32xf32>
    %151 = arith.addf %148, %92 : vector<8x32xf32>
    %152 = vector.extract_strided_slice %150 {offsets = [0, 0], sizes = [1, 32], strides = [1, 1]} : vector<2x32xf32> to vector<1x32xf32>
    %153 = vector.extract_strided_slice %150 {offsets = [1, 0], sizes = [1, 32], strides = [1, 1]} : vector<2x32xf32> to vector<1x32xf32>
    %cst_59 = arith.constant dense<0.000000e+00> : vector<8xf32>
    %154 = vector.multi_reduction <add>, %151, %cst_59 [1] : vector<8x32xf32> to vector<8xf32>
    %155 = vector.shape_cast %154 : vector<8xf32> to vector<8x1xf32>
    %cst_60 = arith.constant 3.200000e+01 : f32
    %156 = vector.broadcast %cst_60 : f32 to vector<8x1xf32>
    %157 = arith.divf %155, %156 : vector<8x1xf32>
    %158 = vector.broadcast %157 : vector<8x1xf32> to vector<8x32xf32>
    %159 = arith.subf %151, %158 : vector<8x32xf32>
    %160 = arith.mulf %159, %159 : vector<8x32xf32>
    %cst_61 = arith.constant dense<0.000000e+00> : vector<8xf32>
    %161 = vector.multi_reduction <add>, %160, %cst_61 [1] : vector<8x32xf32> to vector<8xf32>
    %162 = vector.shape_cast %161 : vector<8xf32> to vector<8x1xf32>
    %cst_62 = arith.constant 3.200000e+01 : f32
    %163 = vector.broadcast %cst_62 : f32 to vector<8x1xf32>
    %164 = arith.divf %162, %163 : vector<8x1xf32>
    %165 = vector.broadcast %157 : vector<8x1xf32> to vector<8x32xf32>
    %166 = arith.subf %151, %165 : vector<8x32xf32>
    %cst_63 = arith.constant 9.99999996E-13 : f32
    %167 = vector.broadcast %cst_63 : f32 to vector<8x1xf32>
    %168 = arith.addf %164, %167 : vector<8x1xf32>
    %169 = math.rsqrt %168 : vector<8x1xf32>
    %170 = vector.broadcast %169 : vector<8x1xf32> to vector<8x32xf32>
    %171 = arith.mulf %166, %170 : vector<8x32xf32>
    %172 = vector.broadcast %152 : vector<1x32xf32> to vector<8x32xf32>
    %173 = arith.mulf %171, %172 : vector<8x32xf32>
    %174 = vector.broadcast %153 : vector<1x32xf32> to vector<8x32xf32>
    %175 = arith.addf %173, %174 : vector<8x32xf32>
    %c0_64 = arith.constant 0 : index
    %c0_65 = arith.constant 0 : index
    %c0_66 = arith.constant 0 : index
    %176 = vector.load %arg14[%c0_64, %c0_65, %c0_66] : memref<2x32x64xf32, #tpu.memory_space<vmem>>, vector<1x32x64xf32>
    %177 = vector.shape_cast %176 : vector<1x32x64xf32> to vector<32x64xf32>
    %cst_67 = arith.constant dense<0.000000e+00> : vector<8x64xf32>
    %178 = tpu.matmul %175, %177, %cst_67 {dimension_numbers = #tpu.dot_dimension_numbers<[1], [0], [0], [1], [0, 0, 1, 1], [], []>} : vector<8x32xf32>, vector<32x64xf32>, vector<8x64xf32> -> vector<8x64xf32>
    %c0_68 = arith.constant 0 : index
    %c0_69 = arith.constant 0 : index
    %c0_70 = arith.constant 0 : index
    %179 = vector.load %arg15[%c0_68, %c0_69, %c0_70] : memref<2x1x64xf32, #tpu.memory_space<vmem>>, vector<1x1x64xf32>
    %180 = vector.shape_cast %179 : vector<1x1x64xf32> to vector<1x64xf32>
    %181 = vector.broadcast %180 : vector<1x64xf32> to vector<8x64xf32>
    %182 = arith.addf %178, %181 : vector<8x64xf32>
    %cst_71 = arith.constant 5.000000e-01 : f32
    %183 = vector.broadcast %cst_71 : f32 to vector<8x64xf32>
    %184 = arith.mulf %183, %182 : vector<8x64xf32>
    %cst_72 = arith.constant 0.707106769 : f32
    %185 = vector.broadcast %cst_72 : f32 to vector<8x64xf32>
    %186 = arith.mulf %182, %185 : vector<8x64xf32>
    %cst_73 = arith.constant 0.000000e+00 : f32
    %187 = vector.broadcast %cst_73 : f32 to vector<8x64xf32>
    %188 = arith.cmpf oge, %186, %187 : vector<8x64xf32>
    %cst_74 = arith.constant 1.000000e+00 : f32
    %cst_75 = arith.constant -1.000000e+00 : f32
    %189 = vector.broadcast %cst_74 : f32 to vector<8x64xf32>
    %190 = vector.broadcast %cst_75 : f32 to vector<8x64xf32>
    %191 = arith.select %188, %189, %190 : vector<8x64xi1>, vector<8x64xf32>
    %192 = math.absf %186 : vector<8x64xf32>
    %cst_76 = arith.constant 0.327591091 : f32
    %193 = vector.broadcast %cst_76 : f32 to vector<8x64xf32>
    %194 = arith.mulf %193, %192 : vector<8x64xf32>
    %cst_77 = arith.constant 1.000000e+00 : f32
    %195 = vector.broadcast %cst_77 : f32 to vector<8x64xf32>
    %196 = arith.addf %195, %194 : vector<8x64xf32>
    %cst_78 = arith.constant 1.000000e+00 : f32
    %197 = vector.broadcast %cst_78 : f32 to vector<8x64xf32>
    %198 = arith.divf %197, %196 : vector<8x64xf32>
    %cst_79 = arith.constant 1.06140542 : f32
    %199 = vector.broadcast %cst_79 : f32 to vector<8x64xf32>
    %200 = arith.mulf %198, %199 : vector<8x64xf32>
    %cst_80 = arith.constant -1.45315206 : f32
    %201 = vector.broadcast %cst_80 : f32 to vector<8x64xf32>
    %202 = arith.addf %201, %200 : vector<8x64xf32>
    %203 = arith.mulf %198, %202 : vector<8x64xf32>
    %cst_81 = arith.constant 1.42141378 : f32
    %204 = vector.broadcast %cst_81 : f32 to vector<8x64xf32>
    %205 = arith.addf %204, %203 : vector<8x64xf32>
    %206 = arith.mulf %198, %205 : vector<8x64xf32>
    %cst_82 = arith.constant -0.284496725 : f32
    %207 = vector.broadcast %cst_82 : f32 to vector<8x64xf32>
    %208 = arith.addf %207, %206 : vector<8x64xf32>
    %209 = arith.mulf %198, %208 : vector<8x64xf32>
    %cst_83 = arith.constant 0.254829586 : f32
    %210 = vector.broadcast %cst_83 : f32 to vector<8x64xf32>
    %211 = arith.addf %210, %209 : vector<8x64xf32>
    %212 = arith.mulf %198, %211 : vector<8x64xf32>
    %cst_84 = arith.constant 0.000000e+00 : f32
    %213 = vector.broadcast %cst_84 : f32 to vector<8x64xf32>
    %214 = arith.subf %213, %192 : vector<8x64xf32>
    %215 = arith.mulf %214, %192 : vector<8x64xf32>
    %216 = math.exp %215 : vector<8x64xf32>
    %217 = arith.mulf %212, %216 : vector<8x64xf32>
    %cst_85 = arith.constant 1.000000e+00 : f32
    %218 = vector.broadcast %cst_85 : f32 to vector<8x64xf32>
    %219 = arith.subf %218, %217 : vector<8x64xf32>
    %220 = arith.mulf %191, %219 : vector<8x64xf32>
    %cst_86 = arith.constant 1.000000e+00 : f32
    %221 = vector.broadcast %cst_86 : f32 to vector<8x64xf32>
    %222 = arith.addf %221, %220 : vector<8x64xf32>
    %223 = arith.mulf %184, %222 : vector<8x64xf32>
    %c0_87 = arith.constant 0 : index
    %c0_88 = arith.constant 0 : index
    %c0_89 = arith.constant 0 : index
    %224 = vector.load %arg16[%c0_87, %c0_88, %c0_89] : memref<2x64x32xf32, #tpu.memory_space<vmem>>, vector<1x64x32xf32>
    %225 = vector.shape_cast %224 : vector<1x64x32xf32> to vector<64x32xf32>
    %cst_90 = arith.constant dense<0.000000e+00> : vector<8x32xf32>
    %226 = tpu.matmul %223, %225, %cst_90 {dimension_numbers = #tpu.dot_dimension_numbers<[1], [0], [0], [1], [0, 0, 1, 1], [], []>} : vector<8x64xf32>, vector<64x32xf32>, vector<8x32xf32> -> vector<8x32xf32>
    %c0_91 = arith.constant 0 : index
    %c0_92 = arith.constant 0 : index
    %c0_93 = arith.constant 0 : index
    %227 = vector.load %arg17[%c0_91, %c0_92, %c0_93] : memref<2x1x32xf32, #tpu.memory_space<vmem>>, vector<1x1x32xf32>
    %228 = vector.shape_cast %227 : vector<1x1x32xf32> to vector<1x32xf32>
    %229 = vector.broadcast %228 : vector<1x32xf32> to vector<8x32xf32>
    %230 = arith.addf %226, %229 : vector<8x32xf32>
    %c0_94 = arith.constant 0 : index
    %c0_95 = arith.constant 0 : index
    %c0_96 = arith.constant 0 : index
    %231 = vector.load %arg18[%c0_94, %c0_95, %c0_96] : memref<2x2x32xf32, #tpu.memory_space<vmem>>, vector<1x2x32xf32>
    %232 = vector.shape_cast %231 : vector<1x2x32xf32> to vector<2x32xf32>
    %233 = arith.addf %230, %175 : vector<8x32xf32>
    %234 = vector.extract_strided_slice %232 {offsets = [0, 0], sizes = [1, 32], strides = [1, 1]} : vector<2x32xf32> to vector<1x32xf32>
    %235 = vector.extract_strided_slice %232 {offsets = [1, 0], sizes = [1, 32], strides = [1, 1]} : vector<2x32xf32> to vector<1x32xf32>
    %cst_97 = arith.constant dense<0.000000e+00> : vector<8xf32>
    %236 = vector.multi_reduction <add>, %233, %cst_97 [1] : vector<8x32xf32> to vector<8xf32>
    %237 = vector.shape_cast %236 : vector<8xf32> to vector<8x1xf32>
    %cst_98 = arith.constant 3.200000e+01 : f32
    %238 = vector.broadcast %cst_98 : f32 to vector<8x1xf32>
    %239 = arith.divf %237, %238 : vector<8x1xf32>
    %240 = vector.broadcast %239 : vector<8x1xf32> to vector<8x32xf32>
    %241 = arith.subf %233, %240 : vector<8x32xf32>
    %242 = arith.mulf %241, %241 : vector<8x32xf32>
    %cst_99 = arith.constant dense<0.000000e+00> : vector<8xf32>
    %243 = vector.multi_reduction <add>, %242, %cst_99 [1] : vector<8x32xf32> to vector<8xf32>
    %244 = vector.shape_cast %243 : vector<8xf32> to vector<8x1xf32>
    %cst_100 = arith.constant 3.200000e+01 : f32
    %245 = vector.broadcast %cst_100 : f32 to vector<8x1xf32>
    %246 = arith.divf %244, %245 : vector<8x1xf32>
    %247 = vector.broadcast %239 : vector<8x1xf32> to vector<8x32xf32>
    %248 = arith.subf %233, %247 : vector<8x32xf32>
    %cst_101 = arith.constant 9.99999996E-13 : f32
    %249 = vector.broadcast %cst_101 : f32 to vector<8x1xf32>
    %250 = arith.addf %246, %249 : vector<8x1xf32>
    %251 = math.rsqrt %250 : vector<8x1xf32>
    %252 = vector.broadcast %251 : vector<8x1xf32> to vector<8x32xf32>
    %253 = arith.mulf %248, %252 : vector<8x32xf32>
    %254 = vector.broadcast %234 : vector<1x32xf32> to vector<8x32xf32>
    %255 = arith.mulf %253, %254 : vector<8x32xf32>
    %256 = vector.broadcast %235 : vector<1x32xf32> to vector<8x32xf32>
    %257 = arith.addf %255, %256 : vector<8x32xf32>
    %c1 = arith.constant 1 : index
    %c0_102 = arith.constant 0 : index
    %c0_103 = arith.constant 0 : index
    %258 = vector.load %arg9[%c1, %c0_102, %c0_103] : memref<2x32x96xf32, #tpu.memory_space<vmem>>, vector<1x32x96xf32>
    %259 = vector.shape_cast %258 : vector<1x32x96xf32> to vector<32x96xf32>
    %cst_104 = arith.constant dense<0.000000e+00> : vector<8x96xf32>
    %260 = tpu.matmul %257, %259, %cst_104 {dimension_numbers = #tpu.dot_dimension_numbers<[1], [0], [0], [1], [0, 0, 1, 1], [], []>} : vector<8x32xf32>, vector<32x96xf32>, vector<8x96xf32> -> vector<8x96xf32>
    %c1_105 = arith.constant 1 : index
    %c0_106 = arith.constant 0 : index
    %c0_107 = arith.constant 0 : index
    %261 = vector.load %arg10[%c1_105, %c0_106, %c0_107] : memref<2x1x96xf32, #tpu.memory_space<vmem>>, vector<1x1x96xf32>
    %262 = vector.shape_cast %261 : vector<1x1x96xf32> to vector<1x96xf32>
    %263 = vector.broadcast %262 : vector<1x96xf32> to vector<8x96xf32>
    %264 = arith.addf %260, %263 : vector<8x96xf32>
    %265 = vector.extract_strided_slice %264 {offsets = [0, 0], sizes = [8, 32], strides = [1, 1]} : vector<8x96xf32> to vector<8x32xf32>
    %266 = vector.extract_strided_slice %264 {offsets = [0, 32], sizes = [8, 32], strides = [1, 1]} : vector<8x96xf32> to vector<8x32xf32>
    %267 = vector.extract_strided_slice %264 {offsets = [0, 64], sizes = [8, 32], strides = [1, 1]} : vector<8x96xf32> to vector<8x32xf32>
    %268 = vector.extract_strided_slice %265 {offsets = [0, 0], sizes = [8, 16], strides = [1, 1]} : vector<8x32xf32> to vector<8x16xf32>
    %269 = vector.extract_strided_slice %266 {offsets = [0, 0], sizes = [8, 16], strides = [1, 1]} : vector<8x32xf32> to vector<8x16xf32>
    %270 = vector.extract_strided_slice %267 {offsets = [0, 0], sizes = [8, 16], strides = [1, 1]} : vector<8x32xf32> to vector<8x16xf32>
    %cst_108 = arith.constant dense<0.000000e+00> : vector<8x8xf32>
    %271 = tpu.matmul %268, %269, %cst_108 {dimension_numbers = #tpu.dot_dimension_numbers<[1], [1], [0], [0], [0, 0, 1, 0], [], []>} : vector<8x16xf32>, vector<8x16xf32>, vector<8x8xf32> -> vector<8x8xf32>
    %cst_109 = arith.constant 2.500000e-01 : f32
    %272 = vector.broadcast %cst_109 : f32 to vector<8x8xf32>
    %273 = arith.mulf %271, %272 : vector<8x8xf32>
    %274 = vector.broadcast %12 : vector<1x8xf32> to vector<8x8xf32>
    %275 = arith.addf %273, %274 : vector<8x8xf32>
    %cst_110 = arith.constant dense<0xFF800000> : vector<8xf32>
    %276 = vector.multi_reduction <maximumf>, %275, %cst_110 [1] : vector<8x8xf32> to vector<8xf32>
    %277 = vector.shape_cast %276 : vector<8xf32> to vector<8x1xf32>
    %278 = vector.broadcast %277 : vector<8x1xf32> to vector<8x8xf32>
    %279 = arith.subf %275, %278 : vector<8x8xf32>
    %280 = math.exp %279 : vector<8x8xf32>
    %cst_111 = arith.constant dense<0.000000e+00> : vector<8xf32>
    %281 = vector.multi_reduction <add>, %280, %cst_111 [1] : vector<8x8xf32> to vector<8xf32>
    %282 = vector.shape_cast %281 : vector<8xf32> to vector<8x1xf32>
    %283 = tpu.reciprocal %282 {approx = true} : vector<8x1xf32> -> vector<8x1xf32>
    %284 = vector.broadcast %283 : vector<8x1xf32> to vector<8x8xf32>
    %285 = arith.mulf %280, %284 : vector<8x8xf32>
    %cst_112 = arith.constant dense<0.000000e+00> : vector<8x16xf32>
    %286 = tpu.matmul %285, %270, %cst_112 {dimension_numbers = #tpu.dot_dimension_numbers<[1], [0], [0], [1], [0, 0, 1, 1], [], []>} : vector<8x8xf32>, vector<8x16xf32>, vector<8x16xf32> -> vector<8x16xf32>
    %287 = vector.extract_strided_slice %265 {offsets = [0, 16], sizes = [8, 16], strides = [1, 1]} : vector<8x32xf32> to vector<8x16xf32>
    %288 = vector.extract_strided_slice %266 {offsets = [0, 16], sizes = [8, 16], strides = [1, 1]} : vector<8x32xf32> to vector<8x16xf32>
    %289 = vector.extract_strided_slice %267 {offsets = [0, 16], sizes = [8, 16], strides = [1, 1]} : vector<8x32xf32> to vector<8x16xf32>
    %cst_113 = arith.constant dense<0.000000e+00> : vector<8x8xf32>
    %290 = tpu.matmul %287, %288, %cst_113 {dimension_numbers = #tpu.dot_dimension_numbers<[1], [1], [0], [0], [0, 0, 1, 0], [], []>} : vector<8x16xf32>, vector<8x16xf32>, vector<8x8xf32> -> vector<8x8xf32>
    %cst_114 = arith.constant 2.500000e-01 : f32
    %291 = vector.broadcast %cst_114 : f32 to vector<8x8xf32>
    %292 = arith.mulf %290, %291 : vector<8x8xf32>
    %293 = vector.broadcast %12 : vector<1x8xf32> to vector<8x8xf32>
    %294 = arith.addf %292, %293 : vector<8x8xf32>
    %cst_115 = arith.constant dense<0xFF800000> : vector<8xf32>
    %295 = vector.multi_reduction <maximumf>, %294, %cst_115 [1] : vector<8x8xf32> to vector<8xf32>
    %296 = vector.shape_cast %295 : vector<8xf32> to vector<8x1xf32>
    %297 = vector.broadcast %296 : vector<8x1xf32> to vector<8x8xf32>
    %298 = arith.subf %294, %297 : vector<8x8xf32>
    %299 = math.exp %298 : vector<8x8xf32>
    %cst_116 = arith.constant dense<0.000000e+00> : vector<8xf32>
    %300 = vector.multi_reduction <add>, %299, %cst_116 [1] : vector<8x8xf32> to vector<8xf32>
    %301 = vector.shape_cast %300 : vector<8xf32> to vector<8x1xf32>
    %302 = tpu.reciprocal %301 {approx = true} : vector<8x1xf32> -> vector<8x1xf32>
    %303 = vector.broadcast %302 : vector<8x1xf32> to vector<8x8xf32>
    %304 = arith.mulf %299, %303 : vector<8x8xf32>
    %cst_117 = arith.constant dense<0.000000e+00> : vector<8x16xf32>
    %305 = tpu.matmul %304, %289, %cst_117 {dimension_numbers = #tpu.dot_dimension_numbers<[1], [0], [0], [1], [0, 0, 1, 1], [], []>} : vector<8x8xf32>, vector<8x16xf32>, vector<8x16xf32> -> vector<8x16xf32>
    %306 = tpu.concatenate %286, %305 in 1 : vector<8x16xf32>, vector<8x16xf32> -> vector<8x32xf32>
    %c1_118 = arith.constant 1 : index
    %c0_119 = arith.constant 0 : index
    %c0_120 = arith.constant 0 : index
    %307 = vector.load %arg11[%c1_118, %c0_119, %c0_120] : memref<2x32x32xf32, #tpu.memory_space<vmem>>, vector<1x32x32xf32>
    %308 = vector.shape_cast %307 : vector<1x32x32xf32> to vector<32x32xf32>
    %cst_121 = arith.constant dense<0.000000e+00> : vector<8x32xf32>
    %309 = tpu.matmul %306, %308, %cst_121 {dimension_numbers = #tpu.dot_dimension_numbers<[1], [0], [0], [1], [0, 0, 1, 1], [], []>} : vector<8x32xf32>, vector<32x32xf32>, vector<8x32xf32> -> vector<8x32xf32>
    %c1_122 = arith.constant 1 : index
    %c0_123 = arith.constant 0 : index
    %c0_124 = arith.constant 0 : index
    %310 = vector.load %arg12[%c1_122, %c0_123, %c0_124] : memref<2x1x32xf32, #tpu.memory_space<vmem>>, vector<1x1x32xf32>
    %311 = vector.shape_cast %310 : vector<1x1x32xf32> to vector<1x32xf32>
    %312 = vector.broadcast %311 : vector<1x32xf32> to vector<8x32xf32>
    %313 = arith.addf %309, %312 : vector<8x32xf32>
    %c1_125 = arith.constant 1 : index
    %c0_126 = arith.constant 0 : index
    %c0_127 = arith.constant 0 : index
    %314 = vector.load %arg13[%c1_125, %c0_126, %c0_127] : memref<2x2x32xf32, #tpu.memory_space<vmem>>, vector<1x2x32xf32>
    %315 = vector.shape_cast %314 : vector<1x2x32xf32> to vector<2x32xf32>
    %316 = arith.addf %313, %257 : vector<8x32xf32>
    %317 = vector.extract_strided_slice %315 {offsets = [0, 0], sizes = [1, 32], strides = [1, 1]} : vector<2x32xf32> to vector<1x32xf32>
    %318 = vector.extract_strided_slice %315 {offsets = [1, 0], sizes = [1, 32], strides = [1, 1]} : vector<2x32xf32> to vector<1x32xf32>
    %cst_128 = arith.constant dense<0.000000e+00> : vector<8xf32>
    %319 = vector.multi_reduction <add>, %316, %cst_128 [1] : vector<8x32xf32> to vector<8xf32>
    %320 = vector.shape_cast %319 : vector<8xf32> to vector<8x1xf32>
    %cst_129 = arith.constant 3.200000e+01 : f32
    %321 = vector.broadcast %cst_129 : f32 to vector<8x1xf32>
    %322 = arith.divf %320, %321 : vector<8x1xf32>
    %323 = vector.broadcast %322 : vector<8x1xf32> to vector<8x32xf32>
    %324 = arith.subf %316, %323 : vector<8x32xf32>
    %325 = arith.mulf %324, %324 : vector<8x32xf32>
    %cst_130 = arith.constant dense<0.000000e+00> : vector<8xf32>
    %326 = vector.multi_reduction <add>, %325, %cst_130 [1] : vector<8x32xf32> to vector<8xf32>
    %327 = vector.shape_cast %326 : vector<8xf32> to vector<8x1xf32>
    %cst_131 = arith.constant 3.200000e+01 : f32
    %328 = vector.broadcast %cst_131 : f32 to vector<8x1xf32>
    %329 = arith.divf %327, %328 : vector<8x1xf32>
    %330 = vector.broadcast %322 : vector<8x1xf32> to vector<8x32xf32>
    %331 = arith.subf %316, %330 : vector<8x32xf32>
    %cst_132 = arith.constant 9.99999996E-13 : f32
    %332 = vector.broadcast %cst_132 : f32 to vector<8x1xf32>
    %333 = arith.addf %329, %332 : vector<8x1xf32>
    %334 = math.rsqrt %333 : vector<8x1xf32>
    %335 = vector.broadcast %334 : vector<8x1xf32> to vector<8x32xf32>
    %336 = arith.mulf %331, %335 : vector<8x32xf32>
    %337 = vector.broadcast %317 : vector<1x32xf32> to vector<8x32xf32>
    %338 = arith.mulf %336, %337 : vector<8x32xf32>
    %339 = vector.broadcast %318 : vector<1x32xf32> to vector<8x32xf32>
    %340 = arith.addf %338, %339 : vector<8x32xf32>
    %c1_133 = arith.constant 1 : index
    %c0_134 = arith.constant 0 : index
    %c0_135 = arith.constant 0 : index
    %341 = vector.load %arg14[%c1_133, %c0_134, %c0_135] : memref<2x32x64xf32, #tpu.memory_space<vmem>>, vector<1x32x64xf32>
    %342 = vector.shape_cast %341 : vector<1x32x64xf32> to vector<32x64xf32>
    %cst_136 = arith.constant dense<0.000000e+00> : vector<8x64xf32>
    %343 = tpu.matmul %340, %342, %cst_136 {dimension_numbers = #tpu.dot_dimension_numbers<[1], [0], [0], [1], [0, 0, 1, 1], [], []>} : vector<8x32xf32>, vector<32x64xf32>, vector<8x64xf32> -> vector<8x64xf32>
    %c1_137 = arith.constant 1 : index
    %c0_138 = arith.constant 0 : index
    %c0_139 = arith.constant 0 : index
    %344 = vector.load %arg15[%c1_137, %c0_138, %c0_139] : memref<2x1x64xf32, #tpu.memory_space<vmem>>, vector<1x1x64xf32>
    %345 = vector.shape_cast %344 : vector<1x1x64xf32> to vector<1x64xf32>
    %346 = vector.broadcast %345 : vector<1x64xf32> to vector<8x64xf32>
    %347 = arith.addf %343, %346 : vector<8x64xf32>
    %cst_140 = arith.constant 5.000000e-01 : f32
    %348 = vector.broadcast %cst_140 : f32 to vector<8x64xf32>
    %349 = arith.mulf %348, %347 : vector<8x64xf32>
    %cst_141 = arith.constant 0.707106769 : f32
    %350 = vector.broadcast %cst_141 : f32 to vector<8x64xf32>
    %351 = arith.mulf %347, %350 : vector<8x64xf32>
    %cst_142 = arith.constant 0.000000e+00 : f32
    %352 = vector.broadcast %cst_142 : f32 to vector<8x64xf32>
    %353 = arith.cmpf oge, %351, %352 : vector<8x64xf32>
    %cst_143 = arith.constant 1.000000e+00 : f32
    %cst_144 = arith.constant -1.000000e+00 : f32
    %354 = vector.broadcast %cst_143 : f32 to vector<8x64xf32>
    %355 = vector.broadcast %cst_144 : f32 to vector<8x64xf32>
    %356 = arith.select %353, %354, %355 : vector<8x64xi1>, vector<8x64xf32>
    %357 = math.absf %351 : vector<8x64xf32>
    %cst_145 = arith.constant 0.327591091 : f32
    %358 = vector.broadcast %cst_145 : f32 to vector<8x64xf32>
    %359 = arith.mulf %358, %357 : vector<8x64xf32>
    %cst_146 = arith.constant 1.000000e+00 : f32
    %360 = vector.broadcast %cst_146 : f32 to vector<8x64xf32>
    %361 = arith.addf %360, %359 : vector<8x64xf32>
    %cst_147 = arith.constant 1.000000e+00 : f32
    %362 = vector.broadcast %cst_147 : f32 to vector<8x64xf32>
    %363 = arith.divf %362, %361 : vector<8x64xf32>
    %cst_148 = arith.constant 1.06140542 : f32
    %364 = vector.broadcast %cst_148 : f32 to vector<8x64xf32>
    %365 = arith.mulf %363, %364 : vector<8x64xf32>
    %cst_149 = arith.constant -1.45315206 : f32
    %366 = vector.broadcast %cst_149 : f32 to vector<8x64xf32>
    %367 = arith.addf %366, %365 : vector<8x64xf32>
    %368 = arith.mulf %363, %367 : vector<8x64xf32>
    %cst_150 = arith.constant 1.42141378 : f32
    %369 = vector.broadcast %cst_150 : f32 to vector<8x64xf32>
    %370 = arith.addf %369, %368 : vector<8x64xf32>
    %371 = arith.mulf %363, %370 : vector<8x64xf32>
    %cst_151 = arith.constant -0.284496725 : f32
    %372 = vector.broadcast %cst_151 : f32 to vector<8x64xf32>
    %373 = arith.addf %372, %371 : vector<8x64xf32>
    %374 = arith.mulf %363, %373 : vector<8x64xf32>
    %cst_152 = arith.constant 0.254829586 : f32
    %375 = vector.broadcast %cst_152 : f32 to vector<8x64xf32>
    %376 = arith.addf %375, %374 : vector<8x64xf32>
    %377 = arith.mulf %363, %376 : vector<8x64xf32>
    %cst_153 = arith.constant 0.000000e+00 : f32
    %378 = vector.broadcast %cst_153 : f32 to vector<8x64xf32>
    %379 = arith.subf %378, %357 : vector<8x64xf32>
    %380 = arith.mulf %379, %357 : vector<8x64xf32>
    %381 = math.exp %380 : vector<8x64xf32>
    %382 = arith.mulf %377, %381 : vector<8x64xf32>
    %cst_154 = arith.constant 1.000000e+00 : f32
    %383 = vector.broadcast %cst_154 : f32 to vector<8x64xf32>
    %384 = arith.subf %383, %382 : vector<8x64xf32>
    %385 = arith.mulf %356, %384 : vector<8x64xf32>
    %cst_155 = arith.constant 1.000000e+00 : f32
    %386 = vector.broadcast %cst_155 : f32 to vector<8x64xf32>
    %387 = arith.addf %386, %385 : vector<8x64xf32>
    %388 = arith.mulf %349, %387 : vector<8x64xf32>
    %c1_156 = arith.constant 1 : index
    %c0_157 = arith.constant 0 : index
    %c0_158 = arith.constant 0 : index
    %389 = vector.load %arg16[%c1_156, %c0_157, %c0_158] : memref<2x64x32xf32, #tpu.memory_space<vmem>>, vector<1x64x32xf32>
    %390 = vector.shape_cast %389 : vector<1x64x32xf32> to vector<64x32xf32>
    %cst_159 = arith.constant dense<0.000000e+00> : vector<8x32xf32>
    %391 = tpu.matmul %388, %390, %cst_159 {dimension_numbers = #tpu.dot_dimension_numbers<[1], [0], [0], [1], [0, 0, 1, 1], [], []>} : vector<8x64xf32>, vector<64x32xf32>, vector<8x32xf32> -> vector<8x32xf32>
    %c1_160 = arith.constant 1 : index
    %c0_161 = arith.constant 0 : index
    %c0_162 = arith.constant 0 : index
    %392 = vector.load %arg17[%c1_160, %c0_161, %c0_162] : memref<2x1x32xf32, #tpu.memory_space<vmem>>, vector<1x1x32xf32>
    %393 = vector.shape_cast %392 : vector<1x1x32xf32> to vector<1x32xf32>
    %394 = vector.broadcast %393 : vector<1x32xf32> to vector<8x32xf32>
    %395 = arith.addf %391, %394 : vector<8x32xf32>
    %c1_163 = arith.constant 1 : index
    %c0_164 = arith.constant 0 : index
    %c0_165 = arith.constant 0 : index
    %396 = vector.load %arg18[%c1_163, %c0_164, %c0_165] : memref<2x2x32xf32, #tpu.memory_space<vmem>>, vector<1x2x32xf32>
    %397 = vector.shape_cast %396 : vector<1x2x32xf32> to vector<2x32xf32>
    %398 = arith.addf %395, %340 : vector<8x32xf32>
    %399 = vector.extract_strided_slice %397 {offsets = [0, 0], sizes = [1, 32], strides = [1, 1]} : vector<2x32xf32> to vector<1x32xf32>
    %400 = vector.extract_strided_slice %397 {offsets = [1, 0], sizes = [1, 32], strides = [1, 1]} : vector<2x32xf32> to vector<1x32xf32>
    %cst_166 = arith.constant dense<0.000000e+00> : vector<8xf32>
    %401 = vector.multi_reduction <add>, %398, %cst_166 [1] : vector<8x32xf32> to vector<8xf32>
    %402 = vector.shape_cast %401 : vector<8xf32> to vector<8x1xf32>
    %cst_167 = arith.constant 3.200000e+01 : f32
    %403 = vector.broadcast %cst_167 : f32 to vector<8x1xf32>
    %404 = arith.divf %402, %403 : vector<8x1xf32>
    %405 = vector.broadcast %404 : vector<8x1xf32> to vector<8x32xf32>
    %406 = arith.subf %398, %405 : vector<8x32xf32>
    %407 = arith.mulf %406, %406 : vector<8x32xf32>
    %cst_168 = arith.constant dense<0.000000e+00> : vector<8xf32>
    %408 = vector.multi_reduction <add>, %407, %cst_168 [1] : vector<8x32xf32> to vector<8xf32>
    %409 = vector.shape_cast %408 : vector<8xf32> to vector<8x1xf32>
    %cst_169 = arith.constant 3.200000e+01 : f32
    %410 = vector.broadcast %cst_169 : f32 to vector<8x1xf32>
    %411 = arith.divf %409, %410 : vector<8x1xf32>
    %412 = vector.broadcast %404 : vector<8x1xf32> to vector<8x32xf32>
    %413 = arith.subf %398, %412 : vector<8x32xf32>
    %cst_170 = arith.constant 9.99999996E-13 : f32
    %414 = vector.broadcast %cst_170 : f32 to vector<8x1xf32>
    %415 = arith.addf %411, %414 : vector<8x1xf32>
    %416 = math.rsqrt %415 : vector<8x1xf32>
    %417 = vector.broadcast %416 : vector<8x1xf32> to vector<8x32xf32>
    %418 = arith.mulf %413, %417 : vector<8x32xf32>
    %419 = vector.broadcast %399 : vector<1x32xf32> to vector<8x32xf32>
    %420 = arith.mulf %418, %419 : vector<8x32xf32>
    %421 = vector.broadcast %400 : vector<1x32xf32> to vector<8x32xf32>
    %422 = arith.addf %420, %421 : vector<8x32xf32>
    %c0_171 = arith.constant 0 : index
    %c0_172 = arith.constant 0 : index
    %423 = vector.load %arg19[%c0_171, %c0_172] : memref<32x32xf32, #tpu.memory_space<vmem>>, vector<32x32xf32>
    %cst_173 = arith.constant dense<0.000000e+00> : vector<8x32xf32>
    %424 = tpu.matmul %422, %423, %cst_173 {dimension_numbers = #tpu.dot_dimension_numbers<[1], [0], [0], [1], [0, 0, 1, 1], [], []>} : vector<8x32xf32>, vector<32x32xf32>, vector<8x32xf32> -> vector<8x32xf32>
    %c0_174 = arith.constant 0 : index
    %c0_175 = arith.constant 0 : index
    %425 = vector.load %arg20[%c0_174, %c0_175] : memref<1x32xf32, #tpu.memory_space<vmem>>, vector<1x32xf32>
    %426 = vector.broadcast %425 : vector<1x32xf32> to vector<8x32xf32>
    %427 = arith.addf %424, %426 : vector<8x32xf32>
    %cst_176 = arith.constant 5.000000e-01 : f32
    %428 = vector.broadcast %cst_176 : f32 to vector<8x32xf32>
    %429 = arith.mulf %428, %427 : vector<8x32xf32>
    %cst_177 = arith.constant 0.707106769 : f32
    %430 = vector.broadcast %cst_177 : f32 to vector<8x32xf32>
    %431 = arith.mulf %427, %430 : vector<8x32xf32>
    %cst_178 = arith.constant 0.000000e+00 : f32
    %432 = vector.broadcast %cst_178 : f32 to vector<8x32xf32>
    %433 = arith.cmpf oge, %431, %432 : vector<8x32xf32>
    %cst_179 = arith.constant 1.000000e+00 : f32
    %cst_180 = arith.constant -1.000000e+00 : f32
    %434 = vector.broadcast %cst_179 : f32 to vector<8x32xf32>
    %435 = vector.broadcast %cst_180 : f32 to vector<8x32xf32>
    %436 = arith.select %433, %434, %435 : vector<8x32xi1>, vector<8x32xf32>
    %437 = math.absf %431 : vector<8x32xf32>
    %cst_181 = arith.constant 0.327591091 : f32
    %438 = vector.broadcast %cst_181 : f32 to vector<8x32xf32>
    %439 = arith.mulf %438, %437 : vector<8x32xf32>
    %cst_182 = arith.constant 1.000000e+00 : f32
    %440 = vector.broadcast %cst_182 : f32 to vector<8x32xf32>
    %441 = arith.addf %440, %439 : vector<8x32xf32>
    %cst_183 = arith.constant 1.000000e+00 : f32
    %442 = vector.broadcast %cst_183 : f32 to vector<8x32xf32>
    %443 = arith.divf %442, %441 : vector<8x32xf32>
    %cst_184 = arith.constant 1.06140542 : f32
    %444 = vector.broadcast %cst_184 : f32 to vector<8x32xf32>
    %445 = arith.mulf %443, %444 : vector<8x32xf32>
    %cst_185 = arith.constant -1.45315206 : f32
    %446 = vector.broadcast %cst_185 : f32 to vector<8x32xf32>
    %447 = arith.addf %446, %445 : vector<8x32xf32>
    %448 = arith.mulf %443, %447 : vector<8x32xf32>
    %cst_186 = arith.constant 1.42141378 : f32
    %449 = vector.broadcast %cst_186 : f32 to vector<8x32xf32>
    %450 = arith.addf %449, %448 : vector<8x32xf32>
    %451 = arith.mulf %443, %450 : vector<8x32xf32>
    %cst_187 = arith.constant -0.284496725 : f32
    %452 = vector.broadcast %cst_187 : f32 to vector<8x32xf32>
    %453 = arith.addf %452, %451 : vector<8x32xf32>
    %454 = arith.mulf %443, %453 : vector<8x32xf32>
    %cst_188 = arith.constant 0.254829586 : f32
    %455 = vector.broadcast %cst_188 : f32 to vector<8x32xf32>
    %456 = arith.addf %455, %454 : vector<8x32xf32>
    %457 = arith.mulf %443, %456 : vector<8x32xf32>
    %cst_189 = arith.constant 0.000000e+00 : f32
    %458 = vector.broadcast %cst_189 : f32 to vector<8x32xf32>
    %459 = arith.subf %458, %437 : vector<8x32xf32>
    %460 = arith.mulf %459, %437 : vector<8x32xf32>
    %461 = math.exp %460 : vector<8x32xf32>
    %462 = arith.mulf %457, %461 : vector<8x32xf32>
    %cst_190 = arith.constant 1.000000e+00 : f32
    %463 = vector.broadcast %cst_190 : f32 to vector<8x32xf32>
    %464 = arith.subf %463, %462 : vector<8x32xf32>
    %465 = arith.mulf %436, %464 : vector<8x32xf32>
    %cst_191 = arith.constant 1.000000e+00 : f32
    %466 = vector.broadcast %cst_191 : f32 to vector<8x32xf32>
    %467 = arith.addf %466, %465 : vector<8x32xf32>
    %468 = arith.mulf %429, %467 : vector<8x32xf32>
    %c0_192 = arith.constant 0 : index
    %c0_193 = arith.constant 0 : index
    %469 = vector.load %arg21[%c0_192, %c0_193] : memref<2x32xf32, #tpu.memory_space<vmem>>, vector<2x32xf32>
    %470 = vector.extract_strided_slice %469 {offsets = [0, 0], sizes = [1, 32], strides = [1, 1]} : vector<2x32xf32> to vector<1x32xf32>
    %471 = vector.extract_strided_slice %469 {offsets = [1, 0], sizes = [1, 32], strides = [1, 1]} : vector<2x32xf32> to vector<1x32xf32>
    %cst_194 = arith.constant dense<0.000000e+00> : vector<8xf32>
    %472 = vector.multi_reduction <add>, %468, %cst_194 [1] : vector<8x32xf32> to vector<8xf32>
    %473 = vector.shape_cast %472 : vector<8xf32> to vector<8x1xf32>
    %cst_195 = arith.constant 3.200000e+01 : f32
    %474 = vector.broadcast %cst_195 : f32 to vector<8x1xf32>
    %475 = arith.divf %473, %474 : vector<8x1xf32>
    %476 = vector.broadcast %475 : vector<8x1xf32> to vector<8x32xf32>
    %477 = arith.subf %468, %476 : vector<8x32xf32>
    %478 = arith.mulf %477, %477 : vector<8x32xf32>
    %cst_196 = arith.constant dense<0.000000e+00> : vector<8xf32>
    %479 = vector.multi_reduction <add>, %478, %cst_196 [1] : vector<8x32xf32> to vector<8xf32>
    %480 = vector.shape_cast %479 : vector<8xf32> to vector<8x1xf32>
    %cst_197 = arith.constant 3.200000e+01 : f32
    %481 = vector.broadcast %cst_197 : f32 to vector<8x1xf32>
    %482 = arith.divf %480, %481 : vector<8x1xf32>
    %483 = vector.broadcast %475 : vector<8x1xf32> to vector<8x32xf32>
    %484 = arith.subf %468, %483 : vector<8x32xf32>
    %cst_198 = arith.constant 9.99999996E-13 : f32
    %485 = vector.broadcast %cst_198 : f32 to vector<8x1xf32>
    %486 = arith.addf %482, %485 : vector<8x1xf32>
    %487 = math.rsqrt %486 : vector<8x1xf32>
    %488 = vector.broadcast %487 : vector<8x1xf32> to vector<8x32xf32>
    %489 = arith.mulf %484, %488 : vector<8x32xf32>
    %490 = vector.broadcast %470 : vector<1x32xf32> to vector<8x32xf32>
    %491 = arith.mulf %489, %490 : vector<8x32xf32>
    %492 = vector.broadcast %471 : vector<1x32xf32> to vector<8x32xf32>
    %493 = arith.addf %491, %492 : vector<8x32xf32>
    %c0_199 = arith.constant 0 : index
    %c0_200 = arith.constant 0 : index
    %494 = vector.load %arg22[%c0_199, %c0_200] : memref<32x128xf32, #tpu.memory_space<vmem>>, vector<32x128xf32>
    %cst_201 = arith.constant dense<0.000000e+00> : vector<8x128xf32>
    %495 = tpu.matmul %493, %494, %cst_201 {dimension_numbers = #tpu.dot_dimension_numbers<[1], [0], [0], [1], [0, 0, 1, 1], [], []>} : vector<8x32xf32>, vector<32x128xf32>, vector<8x128xf32> -> vector<8x128xf32>
    %c0_202 = arith.constant 0 : index
    %c0_203 = arith.constant 0 : index
    %496 = vector.load %arg23[%c0_202, %c0_203] : memref<1x128xf32, #tpu.memory_space<vmem>>, vector<1x128xf32>
    %497 = vector.broadcast %496 : vector<1x128xf32> to vector<8x128xf32>
    %498 = arith.addf %495, %497 : vector<8x128xf32>
    %499 = vector.shape_cast %498 : vector<8x128xf32> to vector<1x8x128xf32>
    %c0_204 = arith.constant 0 : index
    %c0_205 = arith.constant 0 : index
    %c0_206 = arith.constant 0 : index
    %500 = vector.load %arg24[%c0_204, %c0_205, %c0_206] : memref<1x8x128xf32, #tpu.memory_space<vmem>>, vector<1x8x128xf32>
    tpu.vector_store %arg24[%c0_204, %c0_205, %c0_206], %499 {strides = array<i32>} : memref<1x8x128xf32, #tpu.memory_space<vmem>>, vector<1x8x128xf32>,
    return
  }
  func.func @transform_0(%arg0: i32) -> (i32, i32, i32) {
    %c0_i32 = arith.constant 0 : i32
    %c0_i32_0 = arith.constant 0 : i32
    %c0_i32_1 = arith.constant 0 : i32
    return %arg0, %c0_i32, %c0_i32_0 : i32, i32, i32
  }
  func.func @transform_1(%arg0: i32) -> (i32, i32, i32) {
    %c0_i32 = arith.constant 0 : i32
    %c0_i32_0 = arith.constant 0 : i32
    %c0_i32_1 = arith.constant 0 : i32
    return %arg0, %c0_i32, %c0_i32_0 : i32, i32, i32
  }
  func.func @transform_2(%arg0: i32) -> (i32, i32, i32) {
    %c0_i32 = arith.constant 0 : i32
    %c0_i32_0 = arith.constant 0 : i32
    %c0_i32_1 = arith.constant 0 : i32
    return %arg0, %c0_i32, %c0_i32_0 : i32, i32, i32
  }
  func.func @transform_3(%arg0: i32) -> (i32, i32, i32) {
    %c0_i32 = arith.constant 0 : i32
    %c0_i32_0 = arith.constant 0 : i32
    %c0_i32_1 = arith.constant 0 : i32
    return %arg0, %c0_i32, %c0_i32_0 : i32, i32, i32
  }
  func.func @transform_4(%arg0: i32) -> (i32, i32) {
    %c0_i32 = arith.constant 0 : i32
    %c0_i32_0 = arith.constant 0 : i32
    %c0_i32_1 = arith.constant 0 : i32
    return %c0_i32, %c0_i32_0 : i32, i32
  }
  func.func @transform_5(%arg0: i32) -> (i32, i32) {
    %c0_i32 = arith.constant 0 : i32
    %c0_i32_0 = arith.constant 0 : i32
    %c0_i32_1 = arith.constant 0 : i32
    return %c0_i32, %c0_i32_0 : i32, i32
  }
  func.func @transform_6(%arg0: i32) -> (i32, i32) {
    %c0_i32 = arith.constant 0 : i32
    %c0_i32_0 = arith.constant 0 : i32
    %c0_i32_1 = arith.constant 0 : i32
    return %c0_i32, %c0_i32_0 : i32, i32
  }
  func.func @transform_7(%arg0: i32) -> (i32, i32) {
    %c0_i32 = arith.constant 0 : i32
    %c0_i32_0 = arith.constant 0 : i32
    %c0_i32_1 = arith.constant 0 : i32
    return %c0_i32, %c0_i32_0 : i32, i32
  }
  func.func @transform_8(%arg0: i32) -> (i32, i32, i32) {
    %c0_i32 = arith.constant 0 : i32
    %c0_i32_0 = arith.constant 0 : i32
    %c0_i32_1 = arith.constant 0 : i32
    %c0_i32_2 = arith.constant 0 : i32
    return %c0_i32, %c0_i32_0, %c0_i32_1 : i32, i32, i32
  }
  func.func @transform_9(%arg0: i32) -> (i32, i32, i32) {
    %c0_i32 = arith.constant 0 : i32
    %c0_i32_0 = arith.constant 0 : i32
    %c0_i32_1 = arith.constant 0 : i32
    %c0_i32_2 = arith.constant 0 : i32
    return %c0_i32, %c0_i32_0, %c0_i32_1 : i32, i32, i32
  }
  func.func @transform_10(%arg0: i32) -> (i32, i32, i32) {
    %c0_i32 = arith.constant 0 : i32
    %c0_i32_0 = arith.constant 0 : i32
    %c0_i32_1 = arith.constant 0 : i32
    %c0_i32_2 = arith.constant 0 : i32
    return %c0_i32, %c0_i32_0, %c0_i32_1 : i32, i32, i32
  }
  func.func @transform_11(%arg0: i32) -> (i32, i32, i32) {
    %c0_i32 = arith.constant 0 : i32
    %c0_i32_0 = arith.constant 0 : i32
    %c0_i32_1 = arith.constant 0 : i32
    %c0_i32_2 = arith.constant 0 : i32
    return %c0_i32, %c0_i32_0, %c0_i32_1 : i32, i32, i32
  }
  func.func @transform_12(%arg0: i32) -> (i32, i32, i32) {
    %c0_i32 = arith.constant 0 : i32
    %c0_i32_0 = arith.constant 0 : i32
    %c0_i32_1 = arith.constant 0 : i32
    %c0_i32_2 = arith.constant 0 : i32
    return %c0_i32, %c0_i32_0, %c0_i32_1 : i32, i32, i32
  }
  func.func @transform_13(%arg0: i32) -> (i32, i32, i32) {
    %c0_i32 = arith.constant 0 : i32
    %c0_i32_0 = arith.constant 0 : i32
    %c0_i32_1 = arith.constant 0 : i32
    %c0_i32_2 = arith.constant 0 : i32
    return %c0_i32, %c0_i32_0, %c0_i32_1 : i32, i32, i32
  }
  func.func @transform_14(%arg0: i32) -> (i32, i32, i32) {
    %c0_i32 = arith.constant 0 : i32
    %c0_i32_0 = arith.constant 0 : i32
    %c0_i32_1 = arith.constant 0 : i32
    %c0_i32_2 = arith.constant 0 : i32
    return %c0_i32, %c0_i32_0, %c0_i32_1 : i32, i32, i32
  }
  func.func @transform_15(%arg0: i32) -> (i32, i32, i32) {
    %c0_i32 = arith.constant 0 : i32
    %c0_i32_0 = arith.constant 0 : i32
    %c0_i32_1 = arith.constant 0 : i32
    %c0_i32_2 = arith.constant 0 : i32
    return %c0_i32, %c0_i32_0, %c0_i32_1 : i32, i32, i32
  }
  func.func @transform_16(%arg0: i32) -> (i32, i32, i32) {
    %c0_i32 = arith.constant 0 : i32
    %c0_i32_0 = arith.constant 0 : i32
    %c0_i32_1 = arith.constant 0 : i32
    %c0_i32_2 = arith.constant 0 : i32
    return %c0_i32, %c0_i32_0, %c0_i32_1 : i32, i32, i32
  }
  func.func @transform_17(%arg0: i32) -> (i32, i32, i32) {
    %c0_i32 = arith.constant 0 : i32
    %c0_i32_0 = arith.constant 0 : i32
    %c0_i32_1 = arith.constant 0 : i32
    %c0_i32_2 = arith.constant 0 : i32
    return %c0_i32, %c0_i32_0, %c0_i32_1 : i32, i32, i32
  }
  func.func @transform_18(%arg0: i32) -> (i32, i32) {
    %c0_i32 = arith.constant 0 : i32
    %c0_i32_0 = arith.constant 0 : i32
    %c0_i32_1 = arith.constant 0 : i32
    return %c0_i32, %c0_i32_0 : i32, i32
  }
  func.func @transform_19(%arg0: i32) -> (i32, i32) {
    %c0_i32 = arith.constant 0 : i32
    %c0_i32_0 = arith.constant 0 : i32
    %c0_i32_1 = arith.constant 0 : i32
    return %c0_i32, %c0_i32_0 : i32, i32
  }
  func.func @transform_20(%arg0: i32) -> (i32, i32) {
    %c0_i32 = arith.constant 0 : i32
    %c0_i32_0 = arith.constant 0 : i32
    %c0_i32_1 = arith.constant 0 : i32
    return %c0_i32, %c0_i32_0 : i32, i32
  }
  func.func @transform_21(%arg0: i32) -> (i32, i32) {
    %c0_i32 = arith.constant 0 : i32
    %c0_i32_0 = arith.constant 0 : i32
    %c0_i32_1 = arith.constant 0 : i32
    return %c0_i32, %c0_i32_0 : i32, i32
  }
  func.func @transform_22(%arg0: i32) -> (i32, i32) {
    %c0_i32 = arith.constant 0 : i32
    %c0_i32_0 = arith.constant 0 : i32
    %c0_i32_1 = arith.constant 0 : i32
    return %c0_i32, %c0_i32_0 : i32, i32
  }
  func.func @transform_23(%arg0: i32) -> (i32, i32, i32) {
    %c0_i32 = arith.constant 0 : i32
    %c0_i32_0 = arith.constant 0 : i32
    %c0_i32_1 = arith.constant 0 : i32
    return %arg0, %c0_i32, %c0_i32_0 : i32, i32, i32
  }
}

</mosaic_0001>

<bundles_post_ra>
// kernel: teacher_forward.1
= control target key start
LH: loop header
LB: loop body
LE: loop exit
PB: predicated region body
PF: predicated region fallthrough
CT: control target
= control target key end

     0   :  { %s2679_s0 = inlined_call_operand.vmem [shape: s32[2,8,1], index: 0, kind: input, shape index: {}]   ;;  %s2680_s1 = inlined_call_operand.vmem [shape: s32[2,8,1], index: 1, kind: input, shape index: {}]   ;;  %s2681_s2 = inlined_call_operand.vmem [shape: f32[2,8,1], index: 2, kind: input, shape index: {}]   ;;  %s2682_s3 = inlined_call_operand.vmem [shape: f32[2,1,8], index: 3, kind: input, shape index: {}]   ;;  %s2683_s4 = inlined_call_operand.vmem [shape: f32[128,32], index: 4, kind: input, shape index: {}]   ;;  %s2684_s5 = inlined_call_operand.vmem [shape: f32[16,32], index: 5, kind: input, shape index: {}]   ;;  %s2685_s6 = inlined_call_operand.vmem [shape: f32[2,32], index: 6, kind: input, shape index: {}]   ;;  %s2686_s7 = inlined_call_operand.vmem [shape: f32[2,32], index: 7, kind: input, shape index: {}]   ;;  %s2687_s8 = inlined_call_operand.vmem [shape: f32[2,32,96], index: 8, kind: input, shape index: {}]   ;;  %s2688_s9 = inlined_call_operand.vmem [shape: f32[2,1,96], index: 9, kind: input, shape index: {}]   ;;  %s2689_s10 = inlined_call_operand.vmem [shape: f32[2,32,32], index: 10, kind: input, shape index: {}]   ;;  %s2690_s11 = inlined_call_operand.vmem [shape: f32[2,1,32], index: 11, kind: input, shape index: {}]   ;;  %s2691_s12 = inlined_call_operand.vmem [shape: f32[2,2,32], index: 12, kind: input, shape index: {}]   ;;  %s2692_s13 = inlined_call_operand.vmem [shape: f32[2,32,64], index: 13, kind: input, shape index: {}]   ;;  %s2693_s14 = inlined_call_operand.vmem [shape: f32[2,1,64], index: 14, kind: input, shape index: {}]   ;;  %s2694_s15 = inlined_call_operand.vmem [shape: f32[2,64,32], index: 15, kind: input, shape index: {}]   ;;  %s2695_s16 = inlined_call_operand.vmem [shape: f32[2,1,32], index: 16, kind: input, shape index: {}]   ;;  %s2696_s17 = inlined_call_operand.vmem [shape: f32[2,2,32], index: 17, kind: input, shape index: {}]   ;;  %s2697_s18 = inlined_call_operand.vmem [shape: f32[32,32], index: 18, kind: input, shape index: {}]   ;;  %s2698_s19 = inlined_call_operand.vmem [shape: f32[1,32], index: 19, kind: input, shape index: {}]   ;;  %s2699_s20 = inlined_call_operand.vmem [shape: f32[2,32], index: 20, kind: input, shape index: {}]   ;;  %s2700_s21 = inlined_call_operand.vmem [shape: f32[32,128], index: 21, kind: input, shape index: {}]   ;;  %s2701_s22 = inlined_call_operand.vmem [shape: f32[1,128], index: 22, kind: input, shape index: {}]   ;;  %s2702_s23 = inlined_call_operand.hbm [shape: f32[2,8,128], index: 23, kind: output, shape index: {}]  }
   0x1   :  { %2715 = sst [smem:[#allocation13_spill]] %s2679_s0 }
   0x2   :  { %2716 = sst [smem:[#allocation14_spill]] %s2680_s1 }
   0x3   :  { %2717 = sst [smem:[#allocation15_spill]] %s2681_s2 }
   0x4   :  { %2718 = sst [smem:[#allocation16_spill]] %s2682_s3 }
   0x5   :  { %2719 = sst [smem:[#allocation17_spill]] %s2683_s4 }
   0x6   :  { %2720 = sst [smem:[#allocation18_spill]] %s2684_s5 }
   0x7   :  { %2721 = sst [smem:[#allocation19_spill]] %s2685_s6 }
   0x8   :  { %2722 = sst [smem:[#allocation20_spill]] %s2686_s7 }
   0x9   :  { %2723 = sst [smem:[#allocation21_spill]] %s2699_s20 }
   0xa   :  { %2724 = sst [smem:[#allocation22_spill]] %s2701_s22 }
   0xb   :  { %2725 = sst [smem:[#allocation23_spill]] %s2702_s23 }
   0xc   :  { %28 = vsyncpa [#allocation3], 0 }
   0xd   :  { %30 = vsyncpa [#allocation3 + $0x1], 0  ;;  %s2236_s4 = smov 0   ;;  %s2238_s30 = smov 0  }
   0xe   :  { %s2240_s24 = smov 0   ;;  %s2242_s25 = smov 0  }
   0xf LB: > { %2726 = sst [smem:[#allocation5_spill]] %s2092_s4  ;;  %s2257_s5 = sadd.s32 4294967295, %s2104_s25   ;;  %s2104_s25 = sphi %s2242_s25, %s2752_s25   ;;  %s2100_s24 = sphi %s2240_s24, %s2754_s24   ;;  %s2096_s30 = sphi %s2238_s30, %s2756_s30   ;;  %s2092_s4 = sphi %s2236_s4, %s2755_s4  }
  0x10   : > { %2727 = sst [smem:[#allocation6_spill]] %s2100_s24  ;;  %s1875_s1 = sadd.s32 4294967294, %s2104_s25  }
  0x11   : > { %2728 = sst [smem:[#allocation7_spill]] %s2104_s25  ;;  %s2261_s26 = sadd.s32 1, %s2104_s25  }
  0x12   : > { %2729 = sst [smem:[#allocation8_spill]] %s2257_s5  ;;  %s546_s2 = sadd.s32 1, %s2100_s24 }
  0x13   : > { %2730 = sst [smem:[#allocation9_spill]] %s2261_s26  ;;  %s543_s6 = ssub.s32 %s2104_s25, %s2261_s26 }
  0x14   : > { %p556_p0 = scmp.ne.s32.totalorder %s2100_s24, %s2096_s30  ;;  %p544_p1 = scmp.eq.s32.totalorder %s543_s6, 0 }
  0x15   : > { %p557_p2 = scmp.eq.s32.totalorder %s2257_s5, 1  ;;  %p562_p3 = scmp.ne.s32.totalorder %s2096_s30, %s2092_s4 }
  0x16   : > { %p563_p4 = scmp.eq.s32.totalorder %s1875_s1, 1  ;;  %p1878_p7 = scmp.ge.s32.totalorder %s2104_s25, 1 }
  0x17   : > { %s2272_s27 = scalar_select %p544_p1, %s2100_s24, %s546_s2  }
  0x18   : > { %p2274_p5 = por %p557_p2, %p556_p0  ;;  %p2278_p6 = por %p563_p4, %p562_p3 }
  0x19   : > { %2731 = sst [smem:[#allocation10_spill]] %s2272_s27  ;;  %p665_p8 = scmp.lt.s32.totalorder %s2104_s25, 3 }
  0x1a   : > { %s2732_s7 = scalar_select %p2274_p5, 1, 0 }
  0x1b   : > { %s2734_s28 = scalar_select %p2278_p6, 1, 0 }
  0x1c   : > { %2733 = sst [smem:[#allocation11_spill]] %s2732_s7  ;;  %p666_p9 = pnand %p1878_p7, %p665_p8 }
  0x1d   : > { %2735 = sst [smem:[#allocation12_spill]] %s2734_s28  ;;  %p739_p10 = scmp.lt.s32.totalorder (!%p666_p9), %s2257_s5, 1 }
  0x1e   : > { %669 = sbr.rel (%p666_p9) target bundleno = 4898 (0x1322), region = 112  ;;  %s2736_s0 = sld [smem:[#allocation17_spill]] (!%p666_p9) }
  0x1f   : > { %s2737_s2 = sld [smem:[#allocation13_spill]] (!%p666_p9)  ;;  %s2109_s27 = smov (!%p666_p9), 112  }
  0x20   : > { %s2738_s7 = sld [smem:[#allocation14_spill]] (!%p666_p9)  ;;  %s2111_s29 = smov (!%p666_p9), 96  }
  0x21   : > { %s2739_s1 = sld [smem:[#allocation15_spill]] (!%p666_p9)  ;;  %s2114_s24 = smov (!%p666_p9), 16  }
  0x22   : > { %s2741_s28 = sld [smem:[#allocation18_spill]] (!%p666_p9) }
  0x23   : > { %v2106_v2 = vmov 0   ;;  %s2292_s6 = scalar_select %p739_p10, %s2257_s5, 1  ;;  %v780_v21 = vlaneseq  ;;  %v2107_v24 = vmov 1.0   ;;  %vm822_vm1 = vcmask 261120   ;;  %v900_v62 = vld [vmem:[%s2687_s8 + $0x18] sm:$0xff] }
  0x24   : > { %v776_v0 = vld [vmem:[%s2736_s0 + $0x78] sm:$0xff]  ;;  %v775_v1 = vld [vmem:[%s2736_s0 + $0x70] sm:$0xff]  ;;  %1986 = vset.pattern.permute.xlu0 %v2106_v2  ;;  %v774_v3 = vld [vmem:[%s2736_s0 + $0x68] sm:$0xff]  ;;  %1987 = vset.pattern.permute.xlu1 %v2106_v2  ;;  %v2108_v43 = vmov 32.0   ;;  %vm931_vm9 = vcmask 130048   ;;  %s2743_s25 = sld [smem:[#allocation16_spill]] }
  0x25   : > { %801 = vmatpush.msra.mxu0 %v776_v0  ;;  %s1880_s26 = sshll.u32 %s2292_s6, 3  ;;  %v773_v4 = vld [vmem:[%s2736_s0 + $0x60] sm:$0xff]  ;;  %v772_v6 = vld [vmem:[%s2736_s0 + $0x58] sm:$0xff]  ;;  %v771_v7 = vld [vmem:[%s2736_s0 + $0x50] sm:$0xff]  ;;  %v781_v22 = vand.u32 127, %v780_v21  ;;  %1998 = vrcp.f32 %v2108_v43  ;;  %920 = vmatpush.msra.mxu1 %v900_v62  ;;  %vm961_vm10 = vcmask 64512  }
  0x26   : > { %s742_s4 = scalar_lea.vmem %s2737_s2, %s1880_s26  ;;  %s746_s23 = scalar_lea.vmem %s2738_s7, %s1880_s26  ;;  %v770_v9 = vld [vmem:[%s2736_s0 + $0x48] sm:$0xff]  ;;  %v769_v11 = vld [vmem:[%s2736_s0 + $0x40] sm:$0xff]  ;;  %v768_v12 = vld [vmem:[%s2736_s0 + $0x38] sm:$0xff] }
  0x27   : > { %802 = vmatpush.msra.mxu0 %v775_v1  ;;  %v754_v5 = vld [vmem:[%s742_s4] sm:$0xff]  ;;  %v767_v13 = vld [vmem:[%s2736_s0 + $0x30] sm:$0xff]  ;;  %s750_s2 = scalar_lea.vmem %s2739_s1, %s1880_s26  ;;  %v766_v14 = vld [vmem:[%s2736_s0 + $0x28] sm:$0xff]  ;;  %s2742_s1 = sld [smem:[#allocation20_spill]] }
  0x28   : > { %783 = vperm.xlu0 %1986, %v754_v5   ;;  %v755_v8 = vld [vmem:[%s746_s23] sm:$0xff]  ;;  %v764_v17 = vld [vmem:[%s2736_s0 + $0x18] sm:$0xff]  ;;  %v763_v18 = vld [vmem:[%s2736_s0 + $0x10] sm:$0xff]  ;;  %s2113_s7 = smov 64   ;;  %s2744_s20 = sld [smem:[#allocation21_spill]] }
  0x29   : > { %803 = vmatpush.msra.mxu0 %v774_v3  ;;  %v756_v10 = vcvt.s32.f32 %v755_v8  ;;  %v757_v15 = vld [vmem:[%s750_s2] sm:$0xff]  ;;  %v762_v19 = vld [vmem:[%s2736_s0 + $0x8] sm:$0xff]  ;;  %s2740_s2 = sld [smem:[#allocation19_spill]]  ;;  %v899_v0 = vld [vmem:[%s2687_s8 + $0x10] sm:$0xff] }
  0x2a   : > { %v765_v16 = vld [vmem:[%s2736_s0 + $0x20] sm:$0xff]  ;;  %v889_v42 = vsub.f32 1.0, %v757_v15  ;;  %921 = vmatpush.msra.mxu1 %v899_v0  ;;  %v898_v1 = vld [vmem:[%s2687_s8 + $0x8] sm:$0xff]  ;;  %s753_s26 = scalar_lea.vmem %s2743_s25, %s2292_s6  ;;  %s2112_s6 = smov 48  }
  0x2b   : > { %804 = vmatpush.msra.mxu0 %v773_v4  ;;  %v761_v20 = vld [vmem:[%s2736_s0] sm:$0xff]  ;;  %v1999_v44 = vpop.eup %1998  ;;  %s2745_s23 = sld [smem:[#allocation8_spill]] }
  0x2c   : > { %v777_v32 = vld [vmem:[%s2741_s28] sm:$0xff]  ;;  %v856_v33 = vperm.slane %v761_v20, 4  ;;  %v827_v45 = vmul.f32 32.0, %v1999_v44  ;;  %vm831_vm2 = vweird.f32 %v1999_v44  ;;  %922 = vmatpush.msra.mxu1 %v898_v1  ;;  %s2110_s28 = smov 80   ;;  %s2746_s5 = sld [smem:[#allocation23_spill]] }
  0x2d   : > { %805 = vmatpush.msra.mxu0 %v772_v6  ;;  %v897_v2 = vld [vmem:[%s2687_s8] sm:$0xff] }
  0x2e   : > { %v857_v37 = vadd.f32 %v856_v33, %v777_v32  ;;  %v828_v46 = vsub.f32 1.0, %v827_v45  ;;  %923 = vmatpush.msra.mxu1 %v897_v2 }
  0x2f   : > { %806 = vmatpush.msra.mxu0 %v771_v7  ;;  %v778_v25 = vld [vmem:[%s2740_s2] sm:$0x3] }
  0x30   : > { %794 = vperm.xlu0 %1986, %v756_v10   ;;  %v789_v26 = vrot.slane %v778_v25, 7  ;;  %v799_v30 = vperm.slane %v778_v25, 0  ;;  %v829_v47 = vmul.f32 %v1999_v44, %v828_v46 }
  0x31   : > { %807 = vmatpush.msra.mxu0 %v770_v9 }
  0x32   : > { %v791_v27 = vsub.f32 %v778_v25, %v789_v26  ;;  %v858_v40 = vadd.f32 %v857_v37, %v799_v30  ;;  %v830_v48 = vadd.f32 %v1999_v44, %v829_v47 }
  0x33   : > { %808 = vmatpush.msra.mxu0 %v769_v11 }
  0x34   : > { %v797_v28 = vperm.slane %v791_v27, 1  ;;  %v859_v41 = vsel %vm822_vm1, %v858_v40, 0.0  ;;  %v2354_v49 = vsel %vm831_vm2, %v1999_v44, %v830_v48 }
  0x35   : > { %809 = vmatpush.msra.mxu0 %v768_v12 }
  0x37   : > { %810 = vmatpush.msra.mxu0 %v767_v13 }
  0x38   : > { %885 = vperm.xlu0 %1986, %v757_v15   ;;  %v779_v15 = vld [vmem:[%s2742_s1] sm:$0x3] }
  0x39   : > { %811 = vmatpush.msra.mxu0 %v766_v14 }
  0x3b   : > { %812 = vmatpush.msra.mxu0 %v765_v16 }
  0x3d   : > { %813 = vmatpush.msra.mxu0 %v764_v17 }
  0x3f   : > { %814 = vmatpush.msra.mxu0 %v763_v18 }
  0x41   : > { %815 = vmatpush.msra.mxu0 %v762_v19  ;;  %v852_v19 = vperm.slane %v779_v15, 0 }
  0x43   : > { %816 = vmatpush.msra.mxu0 %v761_v20 }
  0x9a   : > { %v784_v23 = vpop.permute.xlu0 %783 }
  0x9b   : > { %vm785_vm0 = vcmp.eq.s32.totalorder %v784_v23, %v781_v22  ;;  %v854_v23 = vperm.slane %v779_v15, 1  ;;  %v1989_v15 = vld [vmem:[%s2690_s11] ss:$0 sm:$0xff] }
  0x9c   : > { %1884 = vmatmul.msk.f32.vlgmr.msra.gmra.mxu0 %vm785_vm0, %v2107_v24 }
  0xa2   : > { %v795_v29 = vpop.permute.xlu0 %794 }
  0xa3   : > { %v798_v31 = vmul.f32 %v797_v28, %v795_v29 }
  0xa5   : > { %v800_v35 = vadd.f32 %v799_v30, %v798_v31 }
  0xaa   : > { %v886_v30 = vpop.permute.xlu0 %885 }
 0x119   : > { %v818_v34 = vpop.f32.mrf.mxu0 }
 0x11a   : > { %v819_v36 = vadd.f32 %v818_v34, %v777_v32  ;;  %v1988_v34 = vld [vmem:[%s2688_s9] ss:$0 sm:$0xff] }
 0x11c   : > { %v821_v38 = vadd.f32 %v819_v36, %v800_v35 }
 0x11e   : > { %v823_v39 = vsel %vm822_vm1, %v821_v38, 0.0 }
 0x11f   : > { %824 = vadd.xlane.f32.xlu1 %v823_v39 }
 0x127   : > { %860 = vadd.xlane.f32.xlu1 %v859_v41 }
 0x140   : > { %892 = vperm.xlu1 %1987, %v889_v42  }
 0x192   : > { %v825_v50 = vpop.xlane.xlu1 %824 }
 0x193   : > { %v833_v51 = vmul.f32 %v2354_v49, %v825_v50 }
 0x195   : > { %v834_v52 = vsub.f32 %v821_v38, %v833_v51 }
 0x197   : > { %v835_v53 = vmul.f32 %v834_v52, %v834_v52 }
 0x199   : > { %v836_v54 = vsel %vm822_vm1, %v835_v53, 0.0 }
 0x19a   : > { %837 = vadd.xlane.f32.xlu2 %v836_v54  ;;  %v861_v55 = vpop.xlane.xlu1 %860 }
 0x19b   : > { %v862_v56 = vmul.f32 %v861_v55, %v2354_v49 }
 0x19d   : > { %v863_v57 = vsub.f32 %v858_v40, %v862_v56  ;;  %v758_v40 = vld [vmem:[%s753_s26] sm:$0x1] }
 0x19e   : > { %v759_v41 = vsub.f32 1.0, %v758_v40 }
 0x19f   : > { %v864_v58 = vmul.f32 %v863_v57, %v863_v57 }
 0x1a0   : > { %v760_v42 = vmul.f32 -10000.0, %v759_v41 }
 0x1a1   : > { %v865_v59 = vsel %vm822_vm1, %v864_v58, 0.0 }
 0x1a2   : > { %866 = vadd.xlane.f32.xlu2 %v865_v59  ;;  %v2395_v43 = vperm.slane %v760_v42, 0 }
 0x1b2   : > { %v893_v28 = vpop.permute.xlu1 %892 }
 0x20d   : > { %v838_v60 = vpop.xlane.xlu2 %837 }
 0x20e   : > { %v839_v61 = vmul.f32 %v838_v60, %v2354_v49 }
 0x210   : > { %v840_v63 = vadd.f32 1e-12, %v839_v61 }
 0x212   : > { %2000 = vrsqrt.f32 %v840_v63  ;;  %vm847_vm4 = vweird.f32 %v840_v63 }
 0x215   : > { %v867_v3 = vpop.xlane.xlu2 %866 }
 0x216   : > { %v868_v4 = vmul.f32 %v867_v3, %v2354_v49 }
 0x218   : > { %v2001_v5 = vpop.eup %2000  ;;  %v869_v6 = vadd.f32 1e-12, %v868_v4 }
 0x219   : > { %v842_v7 = vmul.f32 %v2001_v5, %v840_v63  ;;  %vm848_vm3 = vweird.f32 %v2001_v5 }
 0x21a   : > { %2002 = vrsqrt.f32 %v869_v6  ;;  %vm849_vm5 = vmor %vm847_vm4, %vm848_vm3  ;;  %vm876_vm7 = vweird.f32 %v869_v6  ;;  %vm1213_vm4 = vcmask 523264  }
 0x21b   : > { %v843_v8 = vmul.f32 %v2001_v5, %v842_v7  ;;  %v1074_v7 = vld [vmem:[%s2689_s10 + $0x18] sm:$0xff] }
 0x21d   : > { %v844_v9 = vmul.f32 0.5, %v843_v8  ;;  %v1073_v8 = vld [vmem:[%s2689_s10 + $0x10] sm:$0xff] }
 0x21f   : > { %v845_v10 = vsub.f32 1.5, %v844_v9  ;;  %v1072_v9 = vld [vmem:[%s2689_s10 + $0x8] sm:$0xff] }
 0x220   : > { %v2003_v11 = vpop.eup %2002 }
 0x221   : > { %v846_v12 = vmul.f32 %v2001_v5, %v845_v10  ;;  %v871_v13 = vmul.f32 %v2003_v11, %v869_v6  ;;  %vm877_vm6 = vweird.f32 %v2003_v11 }
 0x222   : > { %vm878_vm8 = vmor %vm876_vm7, %vm877_vm6 }
 0x223   : > { %v872_v14 = vmul.f32 %v2003_v11, %v871_v13  ;;  %v850_v16 = vsel %vm849_vm5, %v2001_v5, %v846_v12 }
 0x224   : > { %v851_v18 = vmul.f32 %v850_v16, %v834_v52 }
 0x225   : > { %v873_v17 = vmul.f32 0.5, %v872_v14 }
 0x226   : > { %v853_v22 = vmul.f32 %v852_v19, %v851_v18 }
 0x227   : > { %v874_v20 = vsub.f32 1.5, %v873_v17 }
 0x228   : > { %v855_v26 = vadd.f32 %v854_v23, %v853_v22 }
 0x229   : > { %v875_v21 = vmul.f32 %v2003_v11, %v874_v20 }
 0x22a   : > { %v895_v32 = vmul.f32 %v893_v28, %v855_v26  ;;  %v1132_v26 = vld [vmem:[%s2692_s13 + $0x10] sm:$0xff]  ;;  %v1130_v28 = vld [vmem:[%s2692_s13] sm:$0xff] }
 0x22b   : > { %v879_v24 = vsel %vm878_vm8, %v2003_v11, %v875_v21  ;;  %v1071_v11 = vld [vmem:[%s2689_s10] sm:$0xff] }
 0x22c   : > { %v880_v25 = vmul.f32 %v879_v24, %v863_v57 }
 0x22e   : > { %v881_v27 = vmul.f32 %v880_v25, %v852_v19  ;;  %v1133_v25 = vld [vmem:[%s2692_s13 + $0x18] sm:$0xff] }
 0x230   : > { %v882_v29 = vadd.f32 %v881_v27, %v854_v23  ;;  %v1131_v27 = vld [vmem:[%s2692_s13 + $0x8] sm:$0xff] }
 0x232   : > { %v888_v31 = vmul.f32 %v886_v30, %v882_v29 }
 0x234   : > { %v2377_v33 = vadd.f32 %v895_v32, %v888_v31 }
 0x236   : > { %1885 = vmatmul.msk.f32.vlgmr.msra.gmra.mxu1 %vm822_vm1, %v2377_v33 }
 0x2b3   : > { %v925_v35 = vpop.f32.mrf.mxu1 }
 0x2b4   : > { %v926_v36 = vadd.f32 %v1988_v34, %v925_v35 }
 0x2b6   : > { %999 = vrot.lane.b32.xlu0 %v926_v36, %s2109_s27  ;;  %1001 = vrot.lane.b32.xlu2 %v926_v36, %s2110_s28 }
 0x2be   : > { %929 = vrot.lane.b32.xlu0 %v926_v36, %s2111_s29 }
 0x310   : > { %v1002_v37 = vpop.permute.xlu2 %1001 }
 0x311   : > { %1889 = vmatpush.xpose.msk.msra.mxu3 %vm931_vm9, %v1002_v37  ;;  %v1102_v37 = vld [vmem:[%s2691_s12] sm:$0x3] }
 0x312   : > { %v1128_v42 = vperm.slane %v1102_v37, 1 }
 0x315   : > { %1153 = vmatpush.msrb.mxu3 %v1133_v25 }
 0x317   : > { %1154 = vmatpush.msrb.mxu3 %v1132_v26 }
 0x319   : > { %1155 = vmatpush.msrb.mxu3 %v1131_v27 }
 0x31b   : > { %1156 = vmatpush.msrb.mxu3 %v1130_v28 }
 0x328   : > { %v1000_v38 = vpop.permute.xlu0 %999 }
 0x329   : > { %1890 = vmatmul.msk.f32.vlgmr.msra.gmra.mxu3 %vm931_vm9, %v1000_v38 }
 0x330   : > { %v930_v39 = vpop.permute.xlu0 %929 }
 0x331   : > { %1886 = vmatpush.xpose.msk.msra.mxu2 %vm931_vm9, %v930_v39  ;;  %v1126_v39 = vperm.slane %v1102_v37, 0 }
 0x334   : > { %1887 = vmatmul.msk.f32.vlgmr.msra.gmra.mxu2 %vm931_vm9, %v926_v36 }
 0x3ac   : > { %v1024_v44 = vpop.f32.mrf.mxu3 }
 0x3ad   : > { %v1027_v45 = vmul.f32 0.25, %v1024_v44 }
 0x3af   : > { %v1028_v46 = vadd.f32 %v1027_v45, %v2395_v43 }
 0x3b1   : > { %v1029_v47 = vsel %vm961_vm10, %v1028_v46, -inf }
 0x3b2   : > { %1030 = vmax.xlane.f32.xlu0 %v1029_v47 }
 0x3b7   : > { %v953_v48 = vpop.f32.mrf.mxu2 }
 0x3b8   : > { %v956_v50 = vmul.f32 0.25, %v953_v48 }
 0x3ba   : > { %v960_v51 = vadd.f32 %v2395_v43, %v956_v50 }
 0x3bc   : > { %v962_v52 = vsel %vm961_vm10, %v960_v51, -inf }
 0x3bd   : > { %963 = vmax.xlane.f32.xlu2 %v962_v52 }
 0x3d5   : > { %1040 = vrot.lane.b32.xlu2 %v926_v36, %s2112_s6 }
 0x425   : > { %v1031_v53 = vpop.xlane.xlu0 %1030 }
 0x426   : > { %v1032_v54 = vsub.f32 %v1028_v46, %v1031_v53  ;;  %v1990_v46 = vld [vmem:[%s2693_s14] ss:$0 sm:$0xff] }
 0x428   : > { %v1033_v55 = vmul.f32 1.442695, %v1032_v54  ;;  %v1208_v54 = vld [vmem:[%s2694_s15 + $0x38] sm:$0xff] }
 0x42a   : > { %2004 = vpow2.f32 %v1033_v55  ;;  %v1207_v55 = vld [vmem:[%s2694_s15 + $0x30] sm:$0xff] }
 0x430   : > { %v2005_v56 = vpop.eup %2004  ;;  %v964_v57 = vpop.xlane.xlu2 %963 }
 0x431   : > { %v965_v58 = vsub.f32 %v960_v51, %v964_v57  ;;  %v1035_v59 = vsel %vm961_vm10, %v2005_v56, 0.0  ;;  %v1205_v57 = vld [vmem:[%s2694_s15 + $0x20] sm:$0xff] }
 0x432   : > { %1036 = vadd.xlane.f32.xlu1 %v1035_v59  ;;  %v1204_v59 = vld [vmem:[%s2694_s15 + $0x18] sm:$0xff] }
 0x433   : > { %v966_v60 = vmul.f32 1.442695, %v965_v58 }
 0x435   : > { %2006 = vpow2.f32 %v966_v60 }
 0x438   : > { %v1041_v61 = vpop.permute.xlu2 %1040 }
 0x439   : > { %1061 = vmatpush.msrb.mxu2 %v1041_v61  ;;  %v1203_v61 = vld [vmem:[%s2694_s15 + $0x10] sm:$0xff] }
 0x43b   : > { %v2007_v62 = vpop.eup %2006  ;;  %1225 = vmatpush.msra.mxu2 %v1208_v54 }
 0x43c   : > { %v968_v63 = vsel %vm961_vm10, %v2007_v62, 0.0 }
 0x43d   : > { %969 = vadd.xlane.f32.xlu0 %v968_v63  ;;  %1226 = vmatpush.msra.mxu2 %v1207_v55 }
 0x44b   : > { %973 = vrot.lane.b32.xlu1 %v926_v36, %s2113_s7 }
 0x4a5   : > { %v1037_v0 = vpop.xlane.xlu1 %1036 }
 0x4a6   : > { %2008 = vrcp.f32 %v1037_v0  ;;  %v1202_v0 = vld [vmem:[%s2694_s15 + $0x8] sm:$0xff] }
 0x4ac   : > { %v2009_v1 = vpop.eup %2008 }
 0x4ad   : > { %v1039_v2 = vmul.f32 %v2009_v1, %v2005_v56  ;;  %v1206_v56 = vld [vmem:[%s2694_s15 + $0x28] sm:$0xff] }
 0x4ae   : > { %1227 = vmatpush.msra.mxu2 %v1206_v56 }
 0x4af   : > { %1891 = vmatmul.msk.f32.vlgmr.msrb.gmra.mxu2 %vm961_vm10, %v1039_v2 }
 0x4b0   : > { %v970_v3 = vpop.xlane.xlu0 %969  ;;  %1228 = vmatpush.msra.mxu2 %v1205_v57 }
 0x4b1   : > { %2010 = vrcp.f32 %v970_v3  ;;  %v1201_v3 = vld [vmem:[%s2694_s15] sm:$0xff] }
 0x4b2   : > { %1229 = vmatpush.msra.mxu2 %v1204_v59 }
 0x4b4   : > { %1230 = vmatpush.msra.mxu2 %v1203_v61  ;;  %v1992_v61 = vld [vmem:[%s2688_s9 + $0x1] ss:$0 sm:$0xff] }
 0x4b6   : > { %1231 = vmatpush.msra.mxu2 %v1202_v0 }
 0x4b7   : > { %v2011_v4 = vpop.eup %2010 }
 0x4b8   : > { %v972_v6 = vmul.f32 %v2011_v4, %v2007_v62  ;;  %1232 = vmatpush.msra.mxu2 %v1201_v3 }
 0x4bd   : > { %v974_v5 = vpop.permute.xlu1 %973 }
 0x4be   : > { %994 = vmatpush.msrb.mxu1 %v974_v5 }
 0x4bf   : > { %1888 = vmatmul.msk.f32.vlgmr.msrb.gmra.mxu1 %vm961_vm10, %v972_v6 }
 0x4c0   : > { %1094 = vmatpush.msra.mxu1 %v1074_v7 }
 0x4c2   : > { %1095 = vmatpush.msra.mxu1 %v1073_v8 }
 0x4c4   : > { %1096 = vmatpush.msra.mxu1 %v1072_v9 }
 0x4c6   : > { %1097 = vmatpush.msra.mxu1 %v1071_v11 }
 0x532   : > { %v1063_v10 = vpop.f32.mrf.mxu2 }
 0x533   : > { %1067 = vrot.lane.b32.xlu0 %v1063_v10, %s2114_s24 }
 0x53c   : > { %v996_v12 = vpop.f32.mrf.mxu1 }
 0x5a5   : > { %v1068_v13 = vpop.permute.xlu0 %1067 }
 0x5a6   : > { %v1070_v14 = vsel %vm931_vm9, %v996_v12, %v1068_v13 }
 0x5a7   : > { %1892 = vmatmul.msk.f32.vlgmr.msra.gmra.mxu1 %vm822_vm1, %v1070_v14 }
 0x624   : > { %v1099_v16 = vpop.f32.mrf.mxu1 }
 0x625   : > { %v1100_v17 = vadd.f32 %v1989_v15, %v1099_v16 }
 0x627   : > { %v1103_v18 = vadd.f32 %v1100_v17, %v2377_v33 }
 0x629   : > { %v1104_v19 = vsel %vm822_vm1, %v1103_v18, 0.0 }
 0x62a   : > { %1105 = vadd.xlane.f32.xlu2 %v1104_v19 }
 0x69d   : > { %v1106_v20 = vpop.xlane.xlu2 %1105 }
 0x69e   : > { %v1107_v21 = vmul.f32 %v1106_v20, %v2354_v49 }
 0x6a0   : > { %v1108_v22 = vsub.f32 %v1103_v18, %v1107_v21 }
 0x6a2   : > { %v1109_v23 = vmul.f32 %v1108_v22, %v1108_v22 }
 0x6a4   : > { %v1110_v24 = vsel %vm822_vm1, %v1109_v23, 0.0  ;;  %v2115_v23 = vmov -1.0  }
 0x6a5   : > { %1111 = vadd.xlane.f32.xlu1 %v1110_v24 }
 0x718   : > { %v1112_v29 = vpop.xlane.xlu1 %1111 }
 0x719   : > { %v1113_v30 = vmul.f32 %v1112_v29, %v2354_v49  ;;  %v1991_v29 = vld [vmem:[%s2695_s16] ss:$0 sm:$0xff] }
 0x71b   : > { %v1114_v31 = vadd.f32 1e-12, %v1113_v30 }
 0x71d   : > { %2012 = vrsqrt.f32 %v1114_v31  ;;  %vm1121_vm12 = vweird.f32 %v1114_v31 }
 0x723   : > { %v2013_v32 = vpop.eup %2012 }
 0x724   : > { %v1116_v33 = vmul.f32 %v2013_v32, %v1114_v31  ;;  %vm1122_vm11 = vweird.f32 %v2013_v32 }
 0x725   : > { %vm1123_vm13 = vmor %vm1121_vm12, %vm1122_vm11 }
 0x726   : > { %v1117_v34 = vmul.f32 %v2013_v32, %v1116_v33 }
 0x728   : > { %v1118_v35 = vmul.f32 0.5, %v1117_v34 }
 0x72a   : > { %v1119_v36 = vsub.f32 1.5, %v1118_v35 }
 0x72c   : > { %v1120_v38 = vmul.f32 %v2013_v32, %v1119_v36 }
 0x72e   : > { %v1124_v40 = vsel %vm1123_vm13, %v2013_v32, %v1120_v38 }
 0x72f   : > { %v1125_v41 = vmul.f32 %v1124_v40, %v1108_v22  ;;  %v1897_v40 = vld [vmem:[%s2687_s8 + $0x30] sm:$0xff] }
 0x731   : > { %v1127_v44 = vmul.f32 %v1126_v39, %v1125_v41  ;;  %v1898_v39 = vld [vmem:[%s2687_s8 + $0x38] sm:$0xff]  ;;  %v1896_v41 = vld [vmem:[%s2687_s8 + $0x28] sm:$0xff] }
 0x732   : > { %1290 = vmatpush.msrb.mxu1 %v1898_v39 }
 0x733   : > { %v2445_v45 = vadd.f32 %v1128_v42, %v1127_v44  ;;  %v1895_v42 = vld [vmem:[%s2687_s8 + $0x20] sm:$0xff] }
 0x734   : > { %1291 = vmatpush.msrb.mxu1 %v1897_v40 }
 0x735   : > { %1893 = vmatmul.msk.f32.vlgmr.msrb.gmra.mxu3 %vm822_vm1, %v2445_v45 }
 0x736   : > { %1292 = vmatpush.msrb.mxu1 %v1896_v41 }
 0x738   : > { %1293 = vmatpush.msrb.mxu1 %v1895_v42 }
 0x7b8   : > { %v1158_v47 = vpop.f32.mrf.mxu3 }
 0x7b9   : > { %v1159_v48 = vadd.f32 %v1990_v46, %v1158_v47 }
 0x7bb   : > { %v1162_v50 = vmul.f32 0.70710677, %v1159_v48  ;;  %v1161_v26 = vmul.f32 0.5, %v1159_v48 }
 0x7bd   : > { %v1165_v51 = vand.u32 2147483647, %v1162_v50  ;;  %vm1163_vm3 = vcmp.ge.f32.partialorder %v1162_v50, 0.0 }
 0x7be   : > { %v1164_v24 = vsel %vm1163_vm3, 1.0, %v2115_v23 }
 0x7bf   : > { %v1166_v52 = vmul.f32 0.3275911, %v1165_v51  ;;  %v1192_v8 = vsub.f32 0.0, %v1165_v51 }
 0x7c1   : > { %v1167_v53 = vadd.f32 1.0, %v1166_v52  ;;  %v1193_v11 = vmul.f32 %v1192_v8, %v1165_v51  ;;  %v1237_v52 = vld [vmem:[%s2696_s17] sm:$0x3] }
 0x7c2   : > { %v1261_v55 = vperm.slane %v1237_v52, 0 }
 0x7c3   : > { %2014 = vrcp.f32 %v1167_v53  ;;  %v1179_v63 = vand.u32 2147483648, %v1167_v53  ;;  %v1177_v2 = vand.u32 2147483647, %v1167_v53  ;;  %vm1173_vm15 = vweird.f32 %v1167_v53 }
 0x7c4   : > { %v1194_v14 = vmul.f32 1.442695, %v1193_v11 }
 0x7c5   : > { %v1180_v5 = vor.u32 1.1754944e-38, %v1179_v63  ;;  %vm1178_vm2 = vcmp.eq.f32.partialorder %v1177_v2, 8.507059e+37 }
 0x7c6   : > { %2016 = vpow2.f32 %v1194_v14 }
 0x7c9   : > { %v2015_v58 = vpop.eup %2014 }
 0x7ca   : > { %v1169_v60 = vmul.f32 %v2015_v58, %v1167_v53  ;;  %vm1174_vm14 = vweird.f32 %v2015_v58 }
 0x7cb   : > { %vm1175_vm0 = vmor %vm1173_vm15, %vm1174_vm14 }
 0x7cc   : > { %v1170_v62 = vsub.f32 1.0, %v1169_v60  ;;  %v2017_v20 = vpop.eup %2016 }
 0x7ce   : > { %v1171_v1 = vmul.f32 %v2015_v58, %v1170_v62 }
 0x7d0   : > { %v1172_v4 = vadd.f32 %v2015_v58, %v1171_v1 }
 0x7d2   : > { %v1176_v6 = vsel %vm1175_vm0, %v2015_v58, %v1172_v4  ;;  %v1263_v58 = vperm.slane %v1237_v52, 1  ;;  %v1914_v52 = vld [vmem:[%s2692_s13 + $0x20] sm:$0xff] }
 0x7d3   : > { %v1181_v7 = vsel %vm1178_vm2, %v1180_v5, %v1176_v6 }
 0x7d4   : > { %v1183_v9 = vmul.f32 1.0614054, %v1181_v7 }
 0x7d6   : > { %v1184_v10 = vadd.f32 -1.4531521, %v1183_v9 }
 0x7d8   : > { %v1185_v12 = vmul.f32 %v1184_v10, %v1181_v7 }
 0x7da   : > { %v1186_v13 = vadd.f32 1.4214138, %v1185_v12 }
 0x7dc   : > { %v1187_v15 = vmul.f32 %v1186_v13, %v1181_v7 }
 0x7de   : > { %v1188_v16 = vadd.f32 -0.28449672, %v1187_v15 }
 0x7e0   : > { %v1189_v17 = vmul.f32 %v1188_v16, %v1181_v7 }
 0x7e2   : > { %v1190_v18 = vadd.f32 0.2548296, %v1189_v17 }
 0x7e4   : > { %v1191_v19 = vmul.f32 %v1190_v18, %v1181_v7 }
 0x7e6   : > { %v1196_v21 = vmul.f32 %v2017_v20, %v1191_v19 }
 0x7e8   : > { %v1197_v22 = vsub.f32 1.0, %v1196_v21 }
 0x7ea   : > { %v1198_v25 = vmul.f32 %v1197_v22, %v1164_v24 }
 0x7ec   : > { %v1199_v27 = vadd.f32 1.0, %v1198_v25 }
 0x7ee   : > { %v1200_v28 = vmul.f32 %v1199_v27, %v1161_v26 }
 0x7f0   : > { %1894 = vmatmul.msk.f32.vlgmr.msra.gmra.mxu2 %vm1213_vm4, %v1200_v28 }
 0x873   : > { %v1234_v30 = vpop.f32.mrf.mxu2 }
 0x874   : > { %v1235_v31 = vadd.f32 %v1991_v29, %v1234_v30  ;;  %v1910_v29 = vld [vmem:[%s2689_s10 + $0x38] sm:$0xff]  ;;  %v1909_v30 = vld [vmem:[%s2689_s10 + $0x30] sm:$0xff] }
 0x875   : > { %1461 = vmatpush.msrb.mxu0 %v1910_v29 }
 0x876   : > { %v1238_v32 = vadd.f32 %v1235_v31, %v2445_v45  ;;  %v1908_v31 = vld [vmem:[%s2689_s10 + $0x28] sm:$0xff] }
 0x877   : > { %1462 = vmatpush.msrb.mxu0 %v1909_v30 }
 0x878   : > { %v1239_v33 = vsel %vm822_vm1, %v1238_v32, 0.0 }
 0x879   : > { %1240 = vadd.xlane.f32.xlu0 %v1239_v33  ;;  %1463 = vmatpush.msrb.mxu0 %v1908_v31  ;;  %v1907_v33 = vld [vmem:[%s2689_s10 + $0x20] sm:$0xff] }
 0x87b   : > { %1464 = vmatpush.msrb.mxu0 %v1907_v33 }
 0x8ec   : > { %v1241_v34 = vpop.xlane.xlu0 %1240 }
 0x8ed   : > { %v1242_v35 = vmul.f32 %v1241_v34, %v2354_v49 }
 0x8ef   : > { %v1243_v36 = vsub.f32 %v1238_v32, %v1242_v35 }
 0x8f1   : > { %v1244_v37 = vmul.f32 %v1243_v36, %v1243_v36 }
 0x8f3   : > { %v1245_v38 = vsel %vm822_vm1, %v1244_v37, 0.0  ;;  %v1993_v37 = vld [vmem:[%s2690_s11 + $0x1] ss:$0 sm:$0xff] }
 0x8f4   : > { %1246 = vadd.xlane.f32.xlu2 %v1245_v38 }
 0x967   : > { %v1247_v44 = vpop.xlane.xlu2 %1246 }
 0x968   : > { %v1248_v45 = vmul.f32 %v1247_v44, %v2354_v49 }
 0x96a   : > { %v1249_v46 = vadd.f32 1e-12, %v1248_v45 }
 0x96c   : > { %2018 = vrsqrt.f32 %v1249_v46  ;;  %vm1256_vm6 = vweird.f32 %v1249_v46 }
 0x972   : > { %v2019_v47 = vpop.eup %2018 }
 0x973   : > { %v1251_v48 = vmul.f32 %v2019_v47, %v1249_v46  ;;  %vm1257_vm5 = vweird.f32 %v2019_v47 }
 0x974   : > { %vm1258_vm7 = vmor %vm1256_vm6, %vm1257_vm5 }
 0x975   : > { %v1252_v50 = vmul.f32 %v2019_v47, %v1251_v48  ;;  %v1917_v48 = vld [vmem:[%s2692_s13 + $0x38] sm:$0xff] }
 0x977   : > { %v1253_v51 = vmul.f32 0.5, %v1252_v50  ;;  %v1916_v50 = vld [vmem:[%s2692_s13 + $0x30] sm:$0xff] }
 0x979   : > { %v1254_v53 = vsub.f32 1.5, %v1253_v51  ;;  %v1915_v51 = vld [vmem:[%s2692_s13 + $0x28] sm:$0xff] }
 0x97b   : > { %v1255_v54 = vmul.f32 %v2019_v47, %v1254_v53 }
 0x97d   : > { %v1259_v56 = vsel %vm1258_vm7, %v2019_v47, %v1255_v54 }
 0x97e   : > { %v1260_v57 = vmul.f32 %v1259_v56, %v1243_v36 }
 0x980   : > { %v1262_v59 = vmul.f32 %v1261_v55, %v1260_v57 }
 0x982   : > { %v2501_v60 = vadd.f32 %v1263_v58, %v1262_v59 }
 0x984   : > { %1900 = vmatmul.msk.f32.vlgmr.msrb.gmra.mxu1 %vm822_vm1, %v2501_v60 }
 0xa01   : > { %v1295_v62 = vpop.f32.mrf.mxu1 }
 0xa02   : > { %v1296_v63 = vadd.f32 %v1992_v61, %v1295_v62 }
 0xa04   : > { %1364 = vrot.lane.b32.xlu2 %v1296_v63, %s2109_s27  ;;  %1366 = vrot.lane.b32.xlu0 %v1296_v63, %s2110_s28  ;;  %s736_s27 = sand.u32 1, %s2096_s30  }
 0xa05   : > { %1299 = vrot.lane.b32.xlu1 %v1296_v63, %s2111_s29  ;;  %s1879_s28 = sshll.u32 %s736_s27, 3  ;;  %s1934_s29 = sshll.u32 %s2745_s23, 3 }
 0xa06   : > { %s1778_s1 = scalar_lea.hbm %s2746_s5, %s1934_s29  ;;  %s738_s4 = scalar_lea.vmem [#allocation2], %s1879_s28 }
 0xa07   : > { %s1780_s25 = sshll.u32 %s738_s4, 4  ;;  %s1782_s26 = sshll.u32 %s1778_s1, 4  ;;  %s1781_s25 = int_to_ptr.vmem [resolvable:$true] %s1780_s25  ;;  %s1783_s26 = int_to_ptr.hbm [resolvable:$true] %s1782_s26 }
 0xa08   : > { %s2056_s0 = sshra.s32 %s1783_s26, 4  ;;  %s2057_s0 = int_to_ptr.hbm [resolvable:$true] %s2056_s0 }
 0xa09   : > { %s2058_s23 = scalar_lea.hbm %s2057_s0, 8  ;;  %p2063_p0 = scmp.lt.s32.totalorder %s2057_s0, %s2746_s5 }
 0xa0a   : > { %p2059_p11 = scmp.ne.s32.totalorder %s2057_s0, %s2058_s23 }
 0xa0c   : > { %p2060_p12 = pnand %p2059_p11, %p2274_p5 }
 0xa0e   : > { %p2061_p13 = pneg %p2060_p12 }
 0xa5e   : > { %v1365_v2 = vpop.permute.xlu2 %1364 }
 0xa76   : > { %v1367_v0 = vpop.permute.xlu0 %1366 }
 0xa77   : > { %v1300_v1 = vpop.permute.xlu1 %1299 }
 0xa78   : > { %1901 = vmatpush.xpose.msk.msra.mxu3 %vm931_vm9, %v1300_v1 }
 0xa7b   : > { %1902 = vmatmul.msk.f32.vlgmr.msra.gmra.mxu3 %vm931_vm9, %v1296_v63 }
 0xa7c   : > { %1904 = vmatpush.xpose.msk.msrb.mxu3 %vm931_vm9, %v1367_v0 }
 0xa83   : > { %1905 = vmatmul.msk.f32.vlgmr.msrb.gmra.mxu3 %vm931_vm9, %v1365_v2 }
 0xafe   : > { %v1322_v3 = vpop.f32.mrf.mxu3 }
 0xaff   : > { %v1325_v4 = vmul.f32 0.25, %v1322_v3 }
 0xb01   : > { %v1326_v5 = vadd.f32 %v1325_v4, %v2395_v43 }
 0xb03   : > { %v1327_v6 = vsel %vm961_vm10, %v1326_v5, -inf }
 0xb04   : > { %1328 = vmax.xlane.f32.xlu1 %v1327_v6 }
 0xb06   : > { %v1389_v7 = vpop.f32.mrf.mxu3 }
 0xb07   : > { %v1392_v8 = vmul.f32 0.25, %v1389_v7 }
 0xb09   : > { %v1393_v9 = vadd.f32 %v1392_v8, %v2395_v43 }
 0xb0b   : > { %v1394_v10 = vsel %vm961_vm10, %v1393_v9, -inf }
 0xb0c   : > { %1395 = vmax.xlane.f32.xlu0 %v1394_v10 }
 0xb20   : > { %1405 = vrot.lane.b32.xlu0 %v1296_v63, %s2112_s6 }
 0xb77   : > { %v1329_v11 = vpop.xlane.xlu1 %1328 }
 0xb78   : > { %v1330_v12 = vsub.f32 %v1326_v5, %v1329_v11  ;;  %v1994_v5 = vld [vmem:[%s2693_s14 + $0x1] ss:$0 sm:$0xff] }
 0xb7a   : > { %v1331_v13 = vmul.f32 1.442695, %v1330_v12  ;;  %v1927_v12 = vld [vmem:[%s2694_s15 + $0x78] sm:$0xff] }
 0xb7b   : > { %1596 = vmatpush.msra.mxu3 %v1927_v12 }
 0xb7c   : > { %2020 = vpow2.f32 %v1331_v13  ;;  %v1926_v13 = vld [vmem:[%s2694_s15 + $0x70] sm:$0xff] }
 0xb7d   : > { %1597 = vmatpush.msra.mxu3 %v1926_v13 }
 0xb7f   : > { %v1396_v14 = vpop.xlane.xlu0 %1395 }
 0xb80   : > { %v1397_v15 = vsub.f32 %v1393_v9, %v1396_v14  ;;  %v1925_v14 = vld [vmem:[%s2694_s15 + $0x68] sm:$0xff] }
 0xb81   : > { %1598 = vmatpush.msra.mxu3 %v1925_v14 }
 0xb82   : > { %v2021_v16 = vpop.eup %2020  ;;  %v1398_v17 = vmul.f32 1.442695, %v1397_v15  ;;  %v1924_v15 = vld [vmem:[%s2694_s15 + $0x60] sm:$0xff] }
 0xb83   : > { %v1333_v18 = vsel %vm961_vm10, %v2021_v16, 0.0  ;;  %1599 = vmatpush.msra.mxu3 %v1924_v15 }
 0xb84   : > { %2022 = vpow2.f32 %v1398_v17  ;;  %1334 = vadd.xlane.f32.xlu1 %v1333_v18  ;;  %v1923_v17 = vld [vmem:[%s2694_s15 + $0x58] sm:$0xff] }
 0xb85   : > { %1600 = vmatpush.msra.mxu3 %v1923_v17 }
 0xb8a   : > { %v2023_v19 = vpop.eup %2022 }
 0xb8b   : > { %v1400_v43 = vsel %vm961_vm10, %v2023_v19, 0.0 }
 0xb8c   : > { %1401 = vadd.xlane.f32.xlu2 %v1400_v43 }
 0xb92   : > { %v1406_v20 = vpop.permute.xlu0 %1405 }
 0xb93   : > { %1426 = vmatpush.msrb.mxu2 %v1406_v20 }
 0xba4   : > { %1338 = vrot.lane.b32.xlu2 %v1296_v63, %s2113_s7  ;;  %s2062_s7 = scalar_lea.hbm %s2746_s5, 16 }
 0xba5   : > { %p2064_p1 = scmp.lt.s32.totalorder %s2062_s7, %s2058_s23 }
 0xba7   : > { %p2065_p2 = por %p2064_p1, %p2063_p0 }
 0xba9   : > { %p2066_p3 = pnand %p2065_p2, %p2061_p13 }
 0xbf7   : > { %v1335_v21 = vpop.xlane.xlu1 %1334 }
 0xbf8   : > { %2024 = vrcp.f32 %v1335_v21  ;;  %v1921_v21 = vld [vmem:[%s2694_s15 + $0x48] sm:$0xff] }
 0xbfe   : > { %v2025_v24 = vpop.eup %2024 }
 0xbff   : > { %v1402_v22 = vpop.xlane.xlu2 %1401  ;;  %v1337_v26 = vmul.f32 %v2025_v24, %v2021_v16 }
 0xc00   : > { %2026 = vrcp.f32 %v1402_v22 }
 0xc06   : > { %v2027_v25 = vpop.eup %2026 }
 0xc07   : > { %v1404_v27 = vmul.f32 %v2027_v25, %v2023_v19  ;;  %v1339_v28 = vpop.permute.xlu2 %1338  ;;  %v1922_v19 = vld [vmem:[%s2694_s15 + $0x50] sm:$0xff]  ;;  %v1920_v25 = vld [vmem:[%s2694_s15 + $0x40] sm:$0xff] }
 0xc08   : > { %1359 = vmatpush.msra.mxu1 %v1339_v28  ;;  %1601 = vmatpush.msra.mxu3 %v1922_v19 }
 0xc09   : > { %1903 = vmatmul.msk.f32.vlgmr.msra.gmra.mxu1 %vm961_vm10, %v1337_v26  ;;  %1906 = vmatmul.msk.f32.vlgmr.msrb.gmra.mxu2 %vm961_vm10, %v1404_v27 }
 0xc0a   : > { %1523 = vmatpush.msrb.mxu1 %v1917_v48  ;;  %1602 = vmatpush.msra.mxu3 %v1921_v21 }
 0xc0c   : > { %1524 = vmatpush.msrb.mxu1 %v1916_v50  ;;  %1603 = vmatpush.msra.mxu3 %v1920_v25 }
 0xc0e   : > { %1525 = vmatpush.msrb.mxu1 %v1915_v51 }
 0xc10   : > { %1526 = vmatpush.msrb.mxu1 %v1914_v52  ;;  %v1995_v52 = vld [vmem:[%s2695_s16 + $0x1] ss:$0 sm:$0xff] }
 0xc86   : > { %v1361_v34 = vpop.f32.mrf.mxu1 }
 0xc8c   : > { %v1428_v32 = vpop.f32.mrf.mxu2 }
 0xc8d   : > { %1432 = vrot.lane.b32.xlu1 %v1428_v32, %s2114_s24  ;;  %s2748_s24 = sld [smem:[#allocation22_spill]] }
 0xcff   : > { %v1433_v35 = vpop.permute.xlu1 %1432 }
 0xd00   : > { %v1435_v36 = vsel %vm931_vm9, %v1361_v34, %v1433_v35 }
 0xd01   : > { %1912 = vmatmul.msk.f32.vlgmr.msrb.gmra.mxu0 %vm822_vm1, %v1435_v36 }
 0xd7e   : > { %v1466_v38 = vpop.f32.mrf.mxu0 }
 0xd7f   : > { %v1467_v39 = vadd.f32 %v1993_v37, %v1466_v38 }
 0xd81   : > { %v1471_v40 = vadd.f32 %v1467_v39, %v2501_v60  ;;  %v1913_v60 = vld [vmem:[%s2691_s12 + $0x2] sm:$0x3] }
 0xd82   : > { %v1494_v63 = vperm.slane %v1913_v60, 0  ;;  %v1496_v2 = vperm.slane %v1913_v60, 1 }
 0xd83   : > { %v1472_v41 = vsel %vm822_vm1, %v1471_v40, 0.0 }
 0xd84   : > { %1473 = vadd.xlane.f32.xlu0 %v1472_v41 }
 0xdf7   : > { %v1474_v42 = vpop.xlane.xlu0 %1473 }
 0xdf8   : > { %v1475_v44 = vmul.f32 %v1474_v42, %v2354_v49 }
 0xdfa   : > { %v1476_v45 = vsub.f32 %v1471_v40, %v1475_v44 }
 0xdfc   : > { %v1477_v46 = vmul.f32 %v1476_v45, %v1476_v45 }
 0xdfe   : > { %v1478_v47 = vsel %vm822_vm1, %v1477_v46, 0.0 }
 0xdff   : > { %1479 = vadd.xlane.f32.xlu2 %v1478_v47 }
 0xe72   : > { %v1480_v53 = vpop.xlane.xlu2 %1479 }
 0xe73   : > { %v1481_v54 = vmul.f32 %v1480_v53, %v2354_v49 }
 0xe75   : > { %v1482_v55 = vadd.f32 1e-12, %v1481_v54 }
 0xe77   : > { %2028 = vrsqrt.f32 %v1482_v55  ;;  %vm1489_vm9 = vweird.f32 %v1482_v55 }
 0xe7d   : > { %v2029_v56 = vpop.eup %2028 }
 0xe7e   : > { %v1484_v57 = vmul.f32 %v2029_v56, %v1482_v55  ;;  %vm1490_vm8 = vweird.f32 %v2029_v56 }
 0xe7f   : > { %vm1491_vm10 = vmor %vm1489_vm9, %vm1490_vm8 }
 0xe80   : > { %v1485_v58 = vmul.f32 %v2029_v56, %v1484_v57 }
 0xe82   : > { %v1486_v59 = vmul.f32 0.5, %v1485_v58 }
 0xe84   : > { %v1487_v61 = vsub.f32 1.5, %v1486_v59 }
 0xe86   : > { %v1488_v62 = vmul.f32 %v2029_v56, %v1487_v61 }
 0xe88   : > { %v1492_v0 = vsel %vm1491_vm10, %v2029_v56, %v1488_v62  ;;  %v1640_v62 = vld [vmem:[%s2697_s18 + $0x18] sm:$0xff] }
 0xe89   : > { %v1493_v1 = vmul.f32 %v1492_v0, %v1476_v45  ;;  %1660 = vmatpush.msra.mxu2 %v1640_v62  ;;  %v1638_v0 = vld [vmem:[%s2697_s18 + $0x8] sm:$0xff] }
 0xe8b   : > { %v1495_v3 = vmul.f32 %v1494_v63, %v1493_v1  ;;  %v1639_v63 = vld [vmem:[%s2697_s18 + $0x10] sm:$0xff]  ;;  %v1637_v1 = vld [vmem:[%s2697_s18] sm:$0xff] }
 0xe8c   : > { %1661 = vmatpush.msra.mxu2 %v1639_v63  ;;  %v1738_v63 = vld [vmem:[%s2700_s21 + $0x18] sm:$0xff] }
 0xe8d   : > { %v2563_v4 = vadd.f32 %v1496_v2, %v1495_v3  ;;  %1758 = vmatpush.msra.mxu0 %v1738_v63 }
 0xe8e   : > { %1662 = vmatpush.msra.mxu2 %v1638_v0  ;;  %v1736_v0 = vld [vmem:[%s2700_s21 + $0x8] sm:$0xff] }
 0xe8f   : > { %1919 = vmatmul.msk.f32.vlgmr.msrb.gmra.mxu1 %vm822_vm1, %v2563_v4 }
 0xe90   : > { %1663 = vmatpush.msra.mxu2 %v1637_v1  ;;  %v1735_v1 = vld [vmem:[%s2700_s21] sm:$0xff] }
 0xf0c   : > { %v1528_v6 = vpop.f32.mrf.mxu1 }
 0xf0d   : > { %v1529_v7 = vadd.f32 %v1994_v5, %v1528_v6 }
 0xf0f   : > { %v1532_v8 = vmul.f32 0.70710677, %v1529_v7  ;;  %v1531_v48 = vmul.f32 0.5, %v1529_v7 }
 0xf11   : > { %v1535_v9 = vand.u32 2147483647, %v1532_v8  ;;  %vm1533_vm15 = vcmp.ge.f32.partialorder %v1532_v8, 0.0 }
 0xf12   : > { %v1534_v46 = vsel %vm1533_vm15, 1.0, %v2115_v23 }
 0xf13   : > { %v1536_v10 = vmul.f32 0.3275911, %v1535_v9  ;;  %v1562_v30 = vsub.f32 0.0, %v1535_v9 }
 0xf15   : > { %v1537_v11 = vadd.f32 1.0, %v1536_v10  ;;  %v1563_v33 = vmul.f32 %v1562_v30, %v1535_v9  ;;  %v1930_v9 = vld [vmem:[%s2696_s17 + $0x2] sm:$0x3] }
 0xf16   : > { %v1633_v12 = vperm.slane %v1930_v9, 0  ;;  %v1635_v15 = vperm.slane %v1930_v9, 1  ;;  %v1708_v9 = vld [vmem:[%s2744_s20] sm:$0x3]  ;;  %s1768_s20 = scalar_lea.sflag [#allocation3], %s736_s27 }
 0xf17   : > { %2030 = vrcp.f32 %v1537_v11  ;;  %v1549_v20 = vand.u32 2147483648, %v1537_v11  ;;  %v1547_v24 = vand.u32 2147483647, %v1537_v11  ;;  %vm1543_vm12 = vweird.f32 %v1537_v11 }
 0xf18   : > { %v1564_v36 = vmul.f32 1.442695, %v1563_v33 }
 0xf19   : > { %v1550_v27 = vor.u32 1.1754944e-38, %v1549_v20  ;;  %vm1548_vm14 = vcmp.eq.f32.partialorder %v1547_v24, 8.507059e+37 }
 0xf1a   : > { %2032 = vpow2.f32 %v1564_v36 }
 0xf1d   : > { %v2031_v16 = vpop.eup %2030 }
 0xf1e   : > { %v1539_v18 = vmul.f32 %v2031_v16, %v1537_v11  ;;  %vm1544_vm11 = vweird.f32 %v2031_v16 }
 0xf1f   : > { %vm1545_vm13 = vmor %vm1543_vm12, %vm1544_vm11 }
 0xf20   : > { %v1540_v43 = vsub.f32 1.0, %v1539_v18  ;;  %v2033_v42 = vpop.eup %2032  ;;  %v1996_v18 = vld [vmem:[%s2698_s19] ss:$0 sm:$0xff] }
 0xf22   : > { %v1541_v22 = vmul.f32 %v2031_v16, %v1540_v43 }
 0xf24   : > { %v1542_v26 = vadd.f32 %v2031_v16, %v1541_v22 }
 0xf26   : > { %v1546_v28 = vsel %vm1545_vm13, %v2031_v16, %v1542_v26 }
 0xf27   : > { %v1551_v29 = vsel %vm1548_vm14, %v1550_v27, %v1546_v28 }
 0xf28   : > { %v1553_v31 = vmul.f32 1.0614054, %v1551_v29 }
 0xf2a   : > { %v1554_v32 = vadd.f32 -1.4531521, %v1553_v31 }
 0xf2c   : > { %v1555_v34 = vmul.f32 %v1554_v32, %v1551_v29 }
 0xf2e   : > { %v1556_v35 = vadd.f32 1.4214138, %v1555_v34 }
 0xf30   : > { %v1557_v37 = vmul.f32 %v1556_v35, %v1551_v29 }
 0xf32   : > { %v1558_v38 = vadd.f32 -0.28449672, %v1557_v37 }
 0xf34   : > { %v1559_v39 = vmul.f32 %v1558_v38, %v1551_v29 }
 0xf36   : > { %v1560_v40 = vadd.f32 0.2548296, %v1559_v39 }
 0xf38   : > { %v1561_v41 = vmul.f32 %v1560_v40, %v1551_v29 }
 0xf3a   : > { %v1566_v44 = vmul.f32 %v2033_v42, %v1561_v41 }
 0xf3c   : > { %v1567_v45 = vsub.f32 1.0, %v1566_v44 }
 0xf3e   : > { %v1568_v47 = vmul.f32 %v1567_v45, %v1534_v46 }
 0xf40   : > { %v1569_v50 = vadd.f32 1.0, %v1568_v47 }
 0xf42   : > { %v1570_v51 = vmul.f32 %v1569_v50, %v1531_v48 }
 0xf44   : > { %1929 = vmatmul.msk.f32.vlgmr.msra.gmra.mxu3 %vm1213_vm4, %v1570_v51 }
 0xfc7   : > { %v1605_v53 = vpop.f32.mrf.mxu3 }
 0xfc8   : > { %v1606_v54 = vadd.f32 %v1995_v52, %v1605_v53 }
 0xfca   : > { %v1610_v55 = vadd.f32 %v1606_v54, %v2563_v4 }
 0xfcc   : > { %v1611_v56 = vsel %vm822_vm1, %v1610_v55, 0.0 }
 0xfcd   : > { %1612 = vadd.xlane.f32.xlu1 %v1611_v56 }
0x1040   : > { %v1613_v57 = vpop.xlane.xlu1 %1612 }
0x1041   : > { %v1614_v58 = vmul.f32 %v1613_v57, %v2354_v49 }
0x1043   : > { %v1615_v59 = vsub.f32 %v1610_v55, %v1614_v58 }
0x1045   : > { %v1616_v60 = vmul.f32 %v1615_v59, %v1615_v59 }
0x1047   : > { %v1617_v61 = vsel %vm822_vm1, %v1616_v60, 0.0 }
0x1048   : > { %1618 = vadd.xlane.f32.xlu0 %v1617_v61 }
0x10bb   : > { %v1619_v2 = vpop.xlane.xlu0 %1618 }
0x10bc   : > { %v1620_v3 = vmul.f32 %v1619_v2, %v2354_v49 }
0x10be   : > { %v1621_v4 = vadd.f32 1e-12, %v1620_v3 }
0x10c0   : > { %2034 = vrsqrt.f32 %v1621_v4  ;;  %vm1628_vm2 = vweird.f32 %v1621_v4 }
0x10c6   : > { %v2035_v5 = vpop.eup %2034 }
0x10c7   : > { %v1623_v6 = vmul.f32 %v2035_v5, %v1621_v4  ;;  %vm1629_vm0 = vweird.f32 %v2035_v5 }
0x10c8   : > { %vm1630_vm3 = vmor %vm1628_vm2, %vm1629_vm0 }
0x10c9   : > { %v1624_v7 = vmul.f32 %v2035_v5, %v1623_v6 }
0x10cb   : > { %v1625_v8 = vmul.f32 0.5, %v1624_v7 }
0x10cd   : > { %v1626_v10 = vsub.f32 1.5, %v1625_v8 }
0x10cf   : > { %v1627_v11 = vmul.f32 %v2035_v5, %v1626_v10 }
0x10d1   : > { %v1631_v13 = vsel %vm1630_vm3, %v2035_v5, %v1627_v11 }
0x10d2   : > { %v1632_v14 = vmul.f32 %v1631_v13, %v1615_v59 }
0x10d4   : > { %v1634_v16 = vmul.f32 %v1633_v12, %v1632_v14  ;;  %v1731_v12 = vperm.slane %v1708_v9, 0  ;;  %v1733_v14 = vperm.slane %v1708_v9, 1 }
0x10d6   : > { %v1636_v17 = vadd.f32 %v1635_v15, %v1634_v16 }
0x10d8   : > { %1931 = vmatmul.msk.f32.vlgmr.msra.gmra.mxu2 %vm822_vm1, %v1636_v17  ;;  %v1997_v17 = vld [vmem:[%s2748_s24] ss:$0 sm:$0xff] }
0x115b   : > { %v1665_v19 = vpop.f32.mrf.mxu2 }
0x115c   : > { %v1666_v43 = vadd.f32 %v1996_v18, %v1665_v19 }
0x115e   : > { %v1669_v20 = vmul.f32 0.70710677, %v1666_v43  ;;  %v1668_v54 = vmul.f32 0.5, %v1666_v43 }
0x1160   : > { %v1672_v21 = vand.u32 2147483647, %v1669_v20  ;;  %vm1670_vm8 = vcmp.ge.f32.partialorder %v1669_v20, 0.0 }
0x1161   : > { %v1671_v52 = vsel %vm1670_vm8, 1.0, %v2115_v23  ;;  %v1737_v23 = vld [vmem:[%s2700_s21 + $0x10] sm:$0xff] }
0x1162   : > { %v1673_v22 = vmul.f32 0.3275911, %v1672_v21  ;;  %v1699_v34 = vsub.f32 0.0, %v1672_v21  ;;  %1759 = vmatpush.msra.mxu0 %v1737_v23 }
0x1164   : > { %v1674_v24 = vadd.f32 1.0, %v1673_v22  ;;  %v1700_v38 = vmul.f32 %v1699_v34, %v1672_v21  ;;  %1760 = vmatpush.msra.mxu0 %v1736_v0 }
0x1166   : > { %2036 = vrcp.f32 %v1674_v24  ;;  %v1686_v28 = vand.u32 2147483648, %v1674_v24  ;;  %v1684_v30 = vand.u32 2147483647, %v1674_v24  ;;  %vm1680_vm5 = vweird.f32 %v1674_v24  ;;  %1761 = vmatpush.msra.mxu0 %v1735_v1 }
0x1167   : > { %v1701_v41 = vmul.f32 1.442695, %v1700_v38 }
0x1168   : > { %v1687_v32 = vor.u32 1.1754944e-38, %v1686_v28  ;;  %vm1685_vm7 = vcmp.eq.f32.partialorder %v1684_v30, 8.507059e+37 }
0x1169   : > { %2038 = vpow2.f32 %v1701_v41 }
0x116c   : > { %v2037_v25 = vpop.eup %2036 }
0x116d   : > { %v1676_v26 = vmul.f32 %v2037_v25, %v1674_v24  ;;  %vm1681_vm4 = vweird.f32 %v2037_v25 }
0x116e   : > { %vm1682_vm6 = vmor %vm1680_vm5, %vm1681_vm4 }
0x116f   : > { %v1677_v27 = vsub.f32 1.0, %v1676_v26  ;;  %v2039_v48 = vpop.eup %2038 }
0x1171   : > { %v1678_v29 = vmul.f32 %v2037_v25, %v1677_v27 }
0x1173   : > { %v1679_v31 = vadd.f32 %v2037_v25, %v1678_v29 }
0x1175   : > { %v1683_v33 = vsel %vm1682_vm6, %v2037_v25, %v1679_v31 }
0x1176   : > { %v1688_v35 = vsel %vm1685_vm7, %v1687_v32, %v1683_v33 }
0x1177   : > { %v1690_v36 = vmul.f32 1.0614054, %v1688_v35 }
0x1179   : > { %v1691_v37 = vadd.f32 -1.4531521, %v1690_v36 }
0x117b   : > { %v1692_v39 = vmul.f32 %v1691_v37, %v1688_v35 }
0x117d   : > { %v1693_v40 = vadd.f32 1.4214138, %v1692_v39 }
0x117f   : > { %v1694_v42 = vmul.f32 %v1693_v40, %v1688_v35 }
0x1181   : > { %v1695_v44 = vadd.f32 -0.28449672, %v1694_v42 }
0x1183   : > { %v1696_v45 = vmul.f32 %v1695_v44, %v1688_v35 }
0x1185   : > { %v1697_v46 = vadd.f32 0.2548296, %v1696_v45 }
0x1187   : > { %v1698_v47 = vmul.f32 %v1697_v46, %v1688_v35 }
0x1189   : > { %v1703_v50 = vmul.f32 %v2039_v48, %v1698_v47 }
0x118b   : > { %v1704_v51 = vsub.f32 1.0, %v1703_v50 }
0x118d   : > { %v1705_v53 = vmul.f32 %v1704_v51, %v1671_v52 }
0x118f   : > { %v1706_v55 = vadd.f32 1.0, %v1705_v53 }
0x1191   : > { %v1707_v56 = vmul.f32 %v1706_v55, %v1668_v54 }
0x1193   : > { %v1709_v57 = vsel %vm822_vm1, %v1707_v56, 0.0 }
0x1194   : > { %1710 = vadd.xlane.f32.xlu0 %v1709_v57 }
0x1207   : > { %v1711_v58 = vpop.xlane.xlu0 %1710 }
0x1208   : > { %v1712_v59 = vmul.f32 %v1711_v58, %v2354_v49 }
0x120a   : > { %v1713_v60 = vsub.f32 %v1707_v56, %v1712_v59 }
0x120c   : > { %v1714_v61 = vmul.f32 %v1713_v60, %v1713_v60 }
0x120e   : > { %v1715_v62 = vsel %vm822_vm1, %v1714_v61, 0.0 }
0x120f   : > { %1716 = vadd.xlane.f32.xlu2 %v1715_v62 }
0x1282   : > { %v1717_v2 = vpop.xlane.xlu2 %1716 }
0x1283   : > { %v1718_v3 = vmul.f32 %v1717_v2, %v2354_v49 }
0x1285   : > { %v1719_v4 = vadd.f32 1e-12, %v1718_v3 }
0x1287   : > { %2040 = vrsqrt.f32 %v1719_v4  ;;  %vm1726_vm10 = vweird.f32 %v1719_v4 }
0x128d   : > { %v2041_v5 = vpop.eup %2040 }
0x128e   : > { %v1721_v6 = vmul.f32 %v2041_v5, %v1719_v4  ;;  %vm1727_vm9 = vweird.f32 %v2041_v5 }
0x128f   : > { %vm1728_vm11 = vmor %vm1726_vm10, %vm1727_vm9 }
0x1290   : > { %v1722_v7 = vmul.f32 %v2041_v5, %v1721_v6 }
0x1292   : > { %v1723_v8 = vmul.f32 0.5, %v1722_v7 }
0x1294   : > { %v1724_v10 = vsub.f32 1.5, %v1723_v8 }
0x1296   : > { %v1725_v11 = vmul.f32 %v2041_v5, %v1724_v10 }
0x1298   : > { %v1729_v13 = vsel %vm1728_vm11, %v2041_v5, %v1725_v11 }
0x1299   : > { %v1730_v49 = vmul.f32 %v1729_v13, %v1713_v60 }
0x129b   : > { %v1732_v15 = vmul.f32 %v1731_v12, %v1730_v49 }
0x129d   : > { %v1734_v16 = vadd.f32 %v1733_v14, %v1732_v15 }
0x129f   : > { %1932 = vmatmul.msk.f32.vlgmr.msra.gmra.mxu0 %vm822_vm1, %v1734_v16 }
0x131c   : > { %v1763_v18 = vpop.f32.mrf.mxu0 }
0x131d   : > { %v1764_v19 = vadd.f32 %v1997_v17, %v1763_v18 }
0x131f   : > { %1766 = vst [vmem:[%s738_s4] sm:$0xff] %v1764_v19 }
0x1320   : > { %2069 = shalt.err (!%p2066_p3)
}
0x1321   : > { %1937 = dma.vmem_to_hbm [thread:$0]  (%p2274_p5), %s1781_s25, 128, %s1783_s26, %s1768_s20  }
0x1322 PF: > { %s2749_s27 = sld [smem:[#allocation7_spill]] }
0x1323   : > { %s2750_s1 = sld [smem:[#allocation5_spill]] }
0x1328   : > { %p1943_p4 = scmp.ge.s32.totalorder %s2749_s27, 2 }
0x1329   : > { %s1794_s24 = sand.u32 1, %s2750_s1  }
0x132a   : > { %p1940_p7 = pnand %p1943_p4, %p2278_p6  ;;  %s1795_s4 = scalar_lea.sflag [#allocation3], %s1794_s24 }
0x132c   : > { %p1941_p8 = pneg %p1940_p7 }
0x132e   : > { %2087 = dma.done.wait (%p1941_p8), %s1795_s4, 128  }
0x132f   : > { %2089 = vsyncadd (%p1941_p8), %s1795_s4, 4294967168  ;;  %s2752_s25 = sld [smem:[#allocation9_spill]]  ;;  %s2755_s4 = smov %s2096_s30 }
0x1330   : > { %s2753_s0 = sld [smem:[#allocation6_spill]] }
0x1331   : > { %s2754_s24 = sld [smem:[#allocation10_spill]] }
0x1335   : > { %p33_p9 = scmp.ge.s32.totalorder %s2752_s25, 4  }
0x1336   : > { %s2756_s30 = smov %s2753_s0 }
0x1337   :  { %35 = sbr.rel (!%p33_p9) target bundleno = 15 (0xf), region = 166 }
0x133c   :  { %1801 = vsyncpa [#allocation3], 1 }
0x133d   :  { %1803 = vsyncpa [#allocation3 + $0x1], 1 }

</bundles_post_ra>
